<compile_context>
chip_gen: v5e
topology: v5e:2x2
jax: 0.10.0
libtpu: 0.0.40
codegen_flags: <defaults>
</compile_context>

<pallas_src>
import functools

import jax
import jax.numpy as jnp
from jax.experimental import pallas as pl
from jax.experimental.pallas import tpu as pltpu


# -----------------------------------------------------------------------------
# Fused kernel: batched dual-sentence LSTM scan + root step + pair head
# -----------------------------------------------------------------------------
def _pair_cross_lstm_kernel(x_ref, wx_ref, bx_ref, wh_ref, bh_ref,
                            whw_ref, whb_ref, wpw_ref, wpb_ref, out_ref):
    # x_ref   : (S*2*PB, D)  embedded tokens for this pair-block.
    #           Row order: timestep-major, then [PB sentence-a rows ;
    #           PB sentence-b rows], then pair-within-block.
    # wx_ref  : (D, 4H)   encode_inputx weight (transposed, x @ W layout)
    # bx_ref  : (1, 4H)   encode_inputx bias
    # wh_ref  : (H, 4H)   encode_prevh weight (transposed)
    # bh_ref  : (1, 4H)   encode_prevh bias
    # whw_ref : (2H, P)   pair-head wh weight (transposed) [mult rows ; abs rows]
    # whb_ref : (1, P)
    # wpw_ref : (P, C)    pair-head wp weight (transposed)
    # wpb_ref : (1, C)
    # out_ref : (PB, C)   log-softmax output for the PB pairs of this block
    H = wh_ref.shape[0]
    PB = out_ref.shape[0]
    R = 2 * PB                         # rows per timestep (a-rows then b-rows)
    S = x_ref.shape[0] // R

    # Loop-invariant loads / adds hoisted off the serial chain.
    wx = wx_ref[...]
    wh = wh_ref[...]
    b = bx_ref[...] + bh_ref[...]                      # bx + bh folded once

    # Input projection for all tokens / sentences / pairs in one MXU matmul.
    xw = jnp.dot(x_ref[...], wx, preferred_element_type=jnp.float32) + b

    def gates(hx):
        # torch.split gate order: i, o, f, u.
        # One EUP sigmoid over the full (R, 4H) tile instead of three (R, H)
        # slices; tanh only on the u quarter.  5 -> 3 transcendental pushes
        # per step (incl. tanh(c)).
        sg = jax.nn.sigmoid(hx)
        u = jnp.tanh(hx[:, 3 * H:4 * H])
        return sg[:, 0:H], sg[:, H:2 * H], sg[:, 2 * H:3 * H], u

    # ---- t = 0 : h = c = 0 -> skip h@wh and f*c_prev entirely ----
    i, o, _, u = gates(xw[0:R, :])
    c = i * u
    h = o * jnp.tanh(c)

    # ---- t = 1 .. S-1, fully unrolled (S static at trace time) ----
    for t in range(1, S):
        hx = xw[t * R:(t + 1) * R, :] + jnp.dot(
            h, wh, preferred_element_type=jnp.float32)
        i, o, f, u = gates(hx)
        c = i * u + f * c
        h = o * jnp.tanh(c)

    # ---- root node step: prev_ch = last child's hidden, prev_h = prev_c = 0.
    # hidden_size == input_size -> encode_inputx path; encode_prevh(0) = bh is
    # already folded into b.  c_prev = 0 -> no f*c term. ----
    hx_root = jnp.dot(h, wx, preferred_element_type=jnp.float32) + b
    i, o, _, u = gates(hx_root)
    c_root = i * u
    h_root = o * jnp.tanh(c_root)

    ha = h_root[0:PB, :]                               # (PB, H)
    hb = h_root[PB:R, :]                               # (PB, H)
    mult_dist = ha * hb
    abs_dist = jnp.abs(ha - hb)

    # cat([mult, abs], 1) @ W  ==  mult @ W[:H] + abs @ W[H:]  (no lane concat)
    w_mult = whw_ref[0:H, :]
    w_abs = whw_ref[H:2 * H, :]
    hid = jax.nn.sigmoid(
        jnp.dot(mult_dist, w_mult, preferred_element_type=jnp.float32)
        + jnp.dot(abs_dist, w_abs, preferred_element_type=jnp.float32)
        + whb_ref[...])                                # (PB, P)
    logits = (jnp.dot(hid, wpw_ref[...], preferred_element_type=jnp.float32)
              + wpb_ref[...])                          # (PB, C)

    m = jnp.max(logits, axis=-1, keepdims=True)
    z = logits - m
    lse = jnp.log(jnp.sum(jnp.exp(z), axis=-1, keepdims=True))
    out_ref[...] = z - lse


def pair_cross_lstm_pallas(x_blocks, wx, bx, wh, bh, wh_w, wh_b, wp_w, wp_b,
                           *, pairs_per_block):
    # x_blocks : (NB, S*2*PB, D) — pair-block-major embedded token slab.
    NB, rows, D = x_blocks.shape
    H = wh.shape[0]
    C = wp_w.shape[1]
    PB = pairs_per_block
    B = NB * PB
    assert rows % (2 * PB) == 0
    assert PB % 8 == 0, "pairs_per_block must be sublane-aligned (multiple of 8)"
    # The root step reuses encode_inputx; only valid when input_dim == hidden.
    assert D == H, "PairCrossLSTM root step requires input_dim == hidden_dim"
    assert wx.shape == (D, 4 * H) and wh_w.shape[0] == 2 * H

    def const2(i):                      # weights: same block every grid step
        return (0, 0)                   # -> stay resident in VMEM, no re-DMA

    return pl.pallas_call(
        _pair_cross_lstm_kernel,
        out_shape=jax.ShapeDtypeStruct((B, C), jnp.float32),
        grid=(NB,),
        in_specs=[
            # activations: one block per grid step, DMA pipelined under compute
            pl.BlockSpec((None, rows, D), lambda i: (i, 0, 0)),
            pl.BlockSpec(wx.shape, const2),
            pl.BlockSpec(bx.shape, const2),
            pl.BlockSpec(wh.shape, const2),
            pl.BlockSpec(bh.shape, const2),
            pl.BlockSpec(wh_w.shape, const2),
            pl.BlockSpec(wh_b.shape, const2),
            pl.BlockSpec(wp_w.shape, const2),
            pl.BlockSpec(wp_b.shape, const2),
        ],
        out_specs=pl.BlockSpec((PB, C), lambda i: (i, 0)),
        compiler_params=pltpu.CompilerParams(
            dimension_semantics=("parallel",)),   # megacore: split pair blocks
    )(x_blocks, wx, bx, wh, bh, wh_w, wh_b, wp_w, wp_b)


# -----------------------------------------------------------------------------
# Full forward (glue in plain JAX: embedding gather + block packing)
# -----------------------------------------------------------------------------
@functools.partial(jax.jit, static_argnames=("pairs_per_block",))
def pair_cross_lstm_forward(params, tokens_a, tokens_b, *, pairs_per_block=8):
    emb = params["embed"]
    B, S = tokens_a.shape
    PB = pairs_per_block
    assert B % PB == 0
    NB = B // PB
    # Row order inside a pair-block (must match the kernel):
    #   row = t * (2*PB) + sentence * PB + pair_within_block
    tok = jnp.stack([tokens_a.reshape(NB, PB, S),
                     tokens_b.reshape(NB, PB, S)], axis=2)      # (NB, PB, 2, S)
    tok = jnp.transpose(tok, (0, 3, 2, 1)).reshape(NB, S * 2 * PB)
    x = jnp.take(emb, tok, axis=0)                              # (NB, S*2PB, D)
    # TODO(synk): the embedding gather could be fused into the kernel (scalar-
    # prefetch token ids + in-kernel take on a VMEM-resident table); kept in
    # XLA since it is off the serial chain.
    return pair_cross_lstm_pallas(
        x, params["wx"], params["bx"], params["wh"], params["bh"],
        params["wh_w"], params["wh_b"], params["wp_w"], params["wp_b"],
        pairs_per_block=PB)


# -----------------------------------------------------------------------------
# Pure-JAX reference (single pair) for correctness check
# -----------------------------------------------------------------------------
def _ref_sentence(x_emb, wx, bx, wh, bh):
    H = wh.shape[0]

    def cell(hx, c_prev):
        i = jax.nn.sigmoid(hx[:, 0 * H:1 * H])
        o = jax.nn.sigmoid(hx[:, 1 * H:2 * H])
        f = jax.nn.sigmoid(hx[:, 2 * H:3 * H])
        u = jnp.tanh(hx[:, 3 * H:4 * H])
        c = i * u + f * c_prev
        return o * jnp.tanh(c), c

    h = jnp.zeros((1, H), jnp.float32)
    c = jnp.zeros((1, H), jnp.float32)
    for t in range(x_emb.shape[0]):
        hx = x_emb[t:t + 1] @ wx + bx + h @ wh + bh
        h, c = cell(hx, c)
    hx = h @ wx + bx + bh                       # root step, prev_h = prev_c = 0
    h_root, _ = cell(hx, jnp.zeros((1, H), jnp.float32))
    return h_root


def _ref_pair(params, toks_a, toks_b):
    xa = jnp.take(params["embed"], toks_a, axis=0)
    xb = jnp.take(params["embed"], toks_b, axis=0)
    ha = _ref_sentence(xa, params["wx"], params["bx"],
                       params["wh"], params["bh"])
    hb = _ref_sentence(xb, params["wx"], params["bx"],
                       params["wh"], params["bh"])
    vec = jnp.concatenate([ha * hb, jnp.abs(ha - hb)], axis=1)
    hid = jax.nn.sigmoid(vec @ params["wh_w"] + params["wh_b"])
    logits = hid @ params["wp_w"] + params["wp_b"]
    return jax.nn.log_softmax(logits, axis=-1)          # (1, C)


def _ref_forward(params, tokens_a, tokens_b):
    rows = [_ref_pair(params, tokens_a[p], tokens_b[p])
            for p in range(tokens_a.shape[0])]
    return jnp.concatenate(rows, axis=0)                # (B, C)


# -----------------------------------------------------------------------------
# Deterministic parameter init (PyTorch-style uniform ranges)
# -----------------------------------------------------------------------------
def init_params(key, input_dim, hidden_dim, pair_dim, num_classes, vocab_size,
                word_scale=0.05):
    ks = jax.random.split(key, 9)

    def uni(k, shape, bound):
        return jax.random.uniform(k, shape, jnp.float32, -bound, bound)

    kx = 1.0 / jnp.sqrt(input_dim)
    kh = 1.0 / jnp.sqrt(hidden_dim)
    kp = 1.0 / jnp.sqrt(2 * hidden_dim)
    kc = 1.0 / jnp.sqrt(pair_dim)

    return {
        "embed": uni(ks[0], (vocab_size, input_dim), word_scale),
        # encode_inputx: Linear(input_dim, 4*hidden) stored as (in, out)
        "wx": uni(ks[1], (input_dim, 4 * hidden_dim), kx),
        "bx": uni(ks[2], (1, 4 * hidden_dim), kx),
        # encode_prevh: Linear(hidden, 4*hidden)
        "wh": uni(ks[3], (hidden_dim, 4 * hidden_dim), kh),
        "bh": uni(ks[4], (1, 4 * hidden_dim), kh),
        # wh: Linear(2*hidden, pair_dim)
        "wh_w": uni(ks[5], (2 * hidden_dim, pair_dim), kp),
        "wh_b": uni(ks[6], (1, pair_dim), kp),
        # wp: Linear(pair_dim, num_classes)
        "wp_w": uni(ks[7], (pair_dim, num_classes), kc),
        "wp_b": uni(ks[8], (1, num_classes), kc),
    }


if __name__ == "__main__":
    INPUT_DIM = 32      # == HIDDEN_DIM -> encode_inputx used at the root
    HIDDEN_DIM = 32
    PAIR_DIM = 32
    NUM_CLASSES = 4
    VOCAB = 64
    SEQ = 8
    BATCH_PAIRS = 16    # pairs per call
    PAIRS_PER_BLOCK = 8 # pairs per grid step (sublane-aligned)

    root = jax.random.PRNGKey(0)
    kp_, ka, kb = jax.random.split(root, 3)
    params = init_params(kp_, INPUT_DIM, HIDDEN_DIM, PAIR_DIM, NUM_CLASSES,
                         VOCAB)
    tokens_a = jax.random.randint(ka, (BATCH_PAIRS, SEQ), 0, VOCAB)
    tokens_b = jax.random.randint(kb, (BATCH_PAIRS, SEQ), 0, VOCAB)

    out = pair_cross_lstm_forward(params, tokens_a, tokens_b,
                                  pairs_per_block=PAIRS_PER_BLOCK)
    out = jax.block_until_ready(out)

    ref = _ref_forward(params, tokens_a, tokens_b)
    assert out.shape == (BATCH_PAIRS, NUM_CLASSES)
    assert jnp.allclose(out, ref, atol=1e-5, rtol=1e-5), (out, ref)

    print("KERNEL_OK")
</pallas_src>

<mosaic_0001>
module attributes {stable_mosaic.version = 11 : i64} {
  func.func @_pair_cross_lstm_kernel(%arg0: i32, %arg1: memref<1x128x32xf32, #tpu.memory_space<vmem>>, %arg2: memref<32x128xf32, #tpu.memory_space<vmem>>, %arg3: memref<1x128xf32, #tpu.memory_space<vmem>>, %arg4: memref<32x128xf32, #tpu.memory_space<vmem>>, %arg5: memref<1x128xf32, #tpu.memory_space<vmem>>, %arg6: memref<64x32xf32, #tpu.memory_space<vmem>>, %arg7: memref<1x32xf32, #tpu.memory_space<vmem>>, %arg8: memref<32x4xf32, #tpu.memory_space<vmem>>, %arg9: memref<1x4xf32, #tpu.memory_space<vmem>>, %arg10: memref<8x4xf32, #tpu.memory_space<vmem>>) attributes {dimension_semantics = [#tpu.dimension_semantics<parallel>], iteration_bounds = array<i64: 2>, scalar_prefetch = 0 : i64, scratch_operands = 0 : i64, tpu.core_type = #tpu.core_type<tc>, window_params = [{transform_indices = @transform_0, window_bounds = array<i64: 1, 128, 32>}, {pipeline_mode = #tpu.pipeline_mode<synchronous>, transform_indices = @transform_1, window_bounds = array<i64: 32, 128>}, {pipeline_mode = #tpu.pipeline_mode<synchronous>, transform_indices = @transform_2, window_bounds = array<i64: 1, 128>}, {pipeline_mode = #tpu.pipeline_mode<synchronous>, transform_indices = @transform_3, window_bounds = array<i64: 32, 128>}, {pipeline_mode = #tpu.pipeline_mode<synchronous>, transform_indices = @transform_4, window_bounds = array<i64: 1, 128>}, {pipeline_mode = #tpu.pipeline_mode<synchronous>, transform_indices = @transform_5, window_bounds = array<i64: 64, 32>}, {pipeline_mode = #tpu.pipeline_mode<synchronous>, transform_indices = @transform_6, window_bounds = array<i64: 1, 32>}, {pipeline_mode = #tpu.pipeline_mode<synchronous>, transform_indices = @transform_7, window_bounds = array<i64: 32, 4>}, {pipeline_mode = #tpu.pipeline_mode<synchronous>, transform_indices = @transform_8, window_bounds = array<i64: 1, 4>}, {transform_indices = @transform_9, window_bounds = array<i64: 8, 4>}]} {
    %c0 = arith.constant 0 : index
    %c0_0 = arith.constant 0 : index
    %0 = vector.load %arg2[%c0, %c0_0] : memref<32x128xf32, #tpu.memory_space<vmem>>, vector<32x128xf32>
    %c0_1 = arith.constant 0 : index
    %c0_2 = arith.constant 0 : index
    %1 = vector.load %arg4[%c0_1, %c0_2] : memref<32x128xf32, #tpu.memory_space<vmem>>, vector<32x128xf32>
    %c0_3 = arith.constant 0 : index
    %c0_4 = arith.constant 0 : index
    %2 = vector.load %arg3[%c0_3, %c0_4] : memref<1x128xf32, #tpu.memory_space<vmem>>, vector<1x128xf32>
    %c0_5 = arith.constant 0 : index
    %c0_6 = arith.constant 0 : index
    %3 = vector.load %arg5[%c0_5, %c0_6] : memref<1x128xf32, #tpu.memory_space<vmem>>, vector<1x128xf32>
    %4 = arith.addf %2, %3 : vector<1x128xf32>
    %c0_7 = arith.constant 0 : index
    %c0_8 = arith.constant 0 : index
    %c0_9 = arith.constant 0 : index
    %5 = vector.load %arg1[%c0_7, %c0_8, %c0_9] : memref<1x128x32xf32, #tpu.memory_space<vmem>>, vector<1x128x32xf32>
    %6 = vector.shape_cast %5 : vector<1x128x32xf32> to vector<128x32xf32>
    %cst = arith.constant dense<0.000000e+00> : vector<128x128xf32>
    %7 = tpu.matmul %6, %0, %cst {dimension_numbers = #tpu.dot_dimension_numbers<[1], [0], [0], [1], [0, 0, 1, 1], [], []>} : vector<128x32xf32>, vector<32x128xf32>, vector<128x128xf32> -> vector<128x128xf32>
    %8 = vector.broadcast %4 : vector<1x128xf32> to vector<128x128xf32>
    %9 = arith.addf %7, %8 : vector<128x128xf32>
    %10 = vector.extract_strided_slice %9 {offsets = [0, 0], sizes = [16, 128], strides = [1, 1]} : vector<128x128xf32> to vector<16x128xf32>
    %11 = arith.negf %10 : vector<16x128xf32>
    %12 = math.exp %11 : vector<16x128xf32>
    %cst_10 = arith.constant 1.000000e+00 : f32
    %13 = vector.broadcast %cst_10 : f32 to vector<16x128xf32>
    %14 = arith.addf %13, %12 : vector<16x128xf32>
    %15 = arith.divf %13, %14 : vector<16x128xf32>
    %16 = vector.extract_strided_slice %10 {offsets = [0, 96], sizes = [16, 32], strides = [1, 1]} : vector<16x128xf32> to vector<16x32xf32>
    %17 = math.tanh %16 : vector<16x32xf32>
    %18 = vector.extract_strided_slice %15 {offsets = [0, 0], sizes = [16, 32], strides = [1, 1]} : vector<16x128xf32> to vector<16x32xf32>
    %19 = vector.extract_strided_slice %15 {offsets = [0, 32], sizes = [16, 32], strides = [1, 1]} : vector<16x128xf32> to vector<16x32xf32>
    %20 = arith.mulf %18, %17 : vector<16x32xf32>
    %21 = math.tanh %20 : vector<16x32xf32>
    %22 = arith.mulf %19, %21 : vector<16x32xf32>
    %23 = vector.extract_strided_slice %9 {offsets = [16, 0], sizes = [16, 128], strides = [1, 1]} : vector<128x128xf32> to vector<16x128xf32>
    %cst_11 = arith.constant dense<0.000000e+00> : vector<16x128xf32>
    %24 = tpu.matmul %22, %1, %cst_11 {dimension_numbers = #tpu.dot_dimension_numbers<[1], [0], [0], [1], [0, 0, 1, 1], [], []>} : vector<16x32xf32>, vector<32x128xf32>, vector<16x128xf32> -> vector<16x128xf32>
    %25 = arith.addf %23, %24 : vector<16x128xf32>
    %26 = arith.negf %25 : vector<16x128xf32>
    %27 = math.exp %26 : vector<16x128xf32>
    %cst_12 = arith.constant 1.000000e+00 : f32
    %28 = vector.broadcast %cst_12 : f32 to vector<16x128xf32>
    %29 = arith.addf %28, %27 : vector<16x128xf32>
    %30 = arith.divf %28, %29 : vector<16x128xf32>
    %31 = vector.extract_strided_slice %25 {offsets = [0, 96], sizes = [16, 32], strides = [1, 1]} : vector<16x128xf32> to vector<16x32xf32>
    %32 = math.tanh %31 : vector<16x32xf32>
    %33 = vector.extract_strided_slice %30 {offsets = [0, 0], sizes = [16, 32], strides = [1, 1]} : vector<16x128xf32> to vector<16x32xf32>
    %34 = vector.extract_strided_slice %30 {offsets = [0, 32], sizes = [16, 32], strides = [1, 1]} : vector<16x128xf32> to vector<16x32xf32>
    %35 = vector.extract_strided_slice %30 {offsets = [0, 64], sizes = [16, 32], strides = [1, 1]} : vector<16x128xf32> to vector<16x32xf32>
    %36 = arith.mulf %33, %32 : vector<16x32xf32>
    %37 = arith.mulf %35, %20 : vector<16x32xf32>
    %38 = arith.addf %36, %37 : vector<16x32xf32>
    %39 = math.tanh %38 : vector<16x32xf32>
    %40 = arith.mulf %34, %39 : vector<16x32xf32>
    %41 = vector.extract_strided_slice %9 {offsets = [32, 0], sizes = [16, 128], strides = [1, 1]} : vector<128x128xf32> to vector<16x128xf32>
    %cst_13 = arith.constant dense<0.000000e+00> : vector<16x128xf32>
    %42 = tpu.matmul %40, %1, %cst_13 {dimension_numbers = #tpu.dot_dimension_numbers<[1], [0], [0], [1], [0, 0, 1, 1], [], []>} : vector<16x32xf32>, vector<32x128xf32>, vector<16x128xf32> -> vector<16x128xf32>
    %43 = arith.addf %41, %42 : vector<16x128xf32>
    %44 = arith.negf %43 : vector<16x128xf32>
    %45 = math.exp %44 : vector<16x128xf32>
    %cst_14 = arith.constant 1.000000e+00 : f32
    %46 = vector.broadcast %cst_14 : f32 to vector<16x128xf32>
    %47 = arith.addf %46, %45 : vector<16x128xf32>
    %48 = arith.divf %46, %47 : vector<16x128xf32>
    %49 = vector.extract_strided_slice %43 {offsets = [0, 96], sizes = [16, 32], strides = [1, 1]} : vector<16x128xf32> to vector<16x32xf32>
    %50 = math.tanh %49 : vector<16x32xf32>
    %51 = vector.extract_strided_slice %48 {offsets = [0, 0], sizes = [16, 32], strides = [1, 1]} : vector<16x128xf32> to vector<16x32xf32>
    %52 = vector.extract_strided_slice %48 {offsets = [0, 32], sizes = [16, 32], strides = [1, 1]} : vector<16x128xf32> to vector<16x32xf32>
    %53 = vector.extract_strided_slice %48 {offsets = [0, 64], sizes = [16, 32], strides = [1, 1]} : vector<16x128xf32> to vector<16x32xf32>
    %54 = arith.mulf %51, %50 : vector<16x32xf32>
    %55 = arith.mulf %53, %38 : vector<16x32xf32>
    %56 = arith.addf %54, %55 : vector<16x32xf32>
    %57 = math.tanh %56 : vector<16x32xf32>
    %58 = arith.mulf %52, %57 : vector<16x32xf32>
    %59 = vector.extract_strided_slice %9 {offsets = [48, 0], sizes = [16, 128], strides = [1, 1]} : vector<128x128xf32> to vector<16x128xf32>
    %cst_15 = arith.constant dense<0.000000e+00> : vector<16x128xf32>
    %60 = tpu.matmul %58, %1, %cst_15 {dimension_numbers = #tpu.dot_dimension_numbers<[1], [0], [0], [1], [0, 0, 1, 1], [], []>} : vector<16x32xf32>, vector<32x128xf32>, vector<16x128xf32> -> vector<16x128xf32>
    %61 = arith.addf %59, %60 : vector<16x128xf32>
    %62 = arith.negf %61 : vector<16x128xf32>
    %63 = math.exp %62 : vector<16x128xf32>
    %cst_16 = arith.constant 1.000000e+00 : f32
    %64 = vector.broadcast %cst_16 : f32 to vector<16x128xf32>
    %65 = arith.addf %64, %63 : vector<16x128xf32>
    %66 = arith.divf %64, %65 : vector<16x128xf32>
    %67 = vector.extract_strided_slice %61 {offsets = [0, 96], sizes = [16, 32], strides = [1, 1]} : vector<16x128xf32> to vector<16x32xf32>
    %68 = math.tanh %67 : vector<16x32xf32>
    %69 = vector.extract_strided_slice %66 {offsets = [0, 0], sizes = [16, 32], strides = [1, 1]} : vector<16x128xf32> to vector<16x32xf32>
    %70 = vector.extract_strided_slice %66 {offsets = [0, 32], sizes = [16, 32], strides = [1, 1]} : vector<16x128xf32> to vector<16x32xf32>
    %71 = vector.extract_strided_slice %66 {offsets = [0, 64], sizes = [16, 32], strides = [1, 1]} : vector<16x128xf32> to vector<16x32xf32>
    %72 = arith.mulf %69, %68 : vector<16x32xf32>
    %73 = arith.mulf %71, %56 : vector<16x32xf32>
    %74 = arith.addf %72, %73 : vector<16x32xf32>
    %75 = math.tanh %74 : vector<16x32xf32>
    %76 = arith.mulf %70, %75 : vector<16x32xf32>
    %77 = vector.extract_strided_slice %9 {offsets = [64, 0], sizes = [16, 128], strides = [1, 1]} : vector<128x128xf32> to vector<16x128xf32>
    %cst_17 = arith.constant dense<0.000000e+00> : vector<16x128xf32>
    %78 = tpu.matmul %76, %1, %cst_17 {dimension_numbers = #tpu.dot_dimension_numbers<[1], [0], [0], [1], [0, 0, 1, 1], [], []>} : vector<16x32xf32>, vector<32x128xf32>, vector<16x128xf32> -> vector<16x128xf32>
    %79 = arith.addf %77, %78 : vector<16x128xf32>
    %80 = arith.negf %79 : vector<16x128xf32>
    %81 = math.exp %80 : vector<16x128xf32>
    %cst_18 = arith.constant 1.000000e+00 : f32
    %82 = vector.broadcast %cst_18 : f32 to vector<16x128xf32>
    %83 = arith.addf %82, %81 : vector<16x128xf32>
    %84 = arith.divf %82, %83 : vector<16x128xf32>
    %85 = vector.extract_strided_slice %79 {offsets = [0, 96], sizes = [16, 32], strides = [1, 1]} : vector<16x128xf32> to vector<16x32xf32>
    %86 = math.tanh %85 : vector<16x32xf32>
    %87 = vector.extract_strided_slice %84 {offsets = [0, 0], sizes = [16, 32], strides = [1, 1]} : vector<16x128xf32> to vector<16x32xf32>
    %88 = vector.extract_strided_slice %84 {offsets = [0, 32], sizes = [16, 32], strides = [1, 1]} : vector<16x128xf32> to vector<16x32xf32>
    %89 = vector.extract_strided_slice %84 {offsets = [0, 64], sizes = [16, 32], strides = [1, 1]} : vector<16x128xf32> to vector<16x32xf32>
    %90 = arith.mulf %87, %86 : vector<16x32xf32>
    %91 = arith.mulf %89, %74 : vector<16x32xf32>
    %92 = arith.addf %90, %91 : vector<16x32xf32>
    %93 = math.tanh %92 : vector<16x32xf32>
    %94 = arith.mulf %88, %93 : vector<16x32xf32>
    %95 = vector.extract_strided_slice %9 {offsets = [80, 0], sizes = [16, 128], strides = [1, 1]} : vector<128x128xf32> to vector<16x128xf32>
    %cst_19 = arith.constant dense<0.000000e+00> : vector<16x128xf32>
    %96 = tpu.matmul %94, %1, %cst_19 {dimension_numbers = #tpu.dot_dimension_numbers<[1], [0], [0], [1], [0, 0, 1, 1], [], []>} : vector<16x32xf32>, vector<32x128xf32>, vector<16x128xf32> -> vector<16x128xf32>
    %97 = arith.addf %95, %96 : vector<16x128xf32>
    %98 = arith.negf %97 : vector<16x128xf32>
    %99 = math.exp %98 : vector<16x128xf32>
    %cst_20 = arith.constant 1.000000e+00 : f32
    %100 = vector.broadcast %cst_20 : f32 to vector<16x128xf32>
    %101 = arith.addf %100, %99 : vector<16x128xf32>
    %102 = arith.divf %100, %101 : vector<16x128xf32>
    %103 = vector.extract_strided_slice %97 {offsets = [0, 96], sizes = [16, 32], strides = [1, 1]} : vector<16x128xf32> to vector<16x32xf32>
    %104 = math.tanh %103 : vector<16x32xf32>
    %105 = vector.extract_strided_slice %102 {offsets = [0, 0], sizes = [16, 32], strides = [1, 1]} : vector<16x128xf32> to vector<16x32xf32>
    %106 = vector.extract_strided_slice %102 {offsets = [0, 32], sizes = [16, 32], strides = [1, 1]} : vector<16x128xf32> to vector<16x32xf32>
    %107 = vector.extract_strided_slice %102 {offsets = [0, 64], sizes = [16, 32], strides = [1, 1]} : vector<16x128xf32> to vector<16x32xf32>
    %108 = arith.mulf %105, %104 : vector<16x32xf32>
    %109 = arith.mulf %107, %92 : vector<16x32xf32>
    %110 = arith.addf %108, %109 : vector<16x32xf32>
    %111 = math.tanh %110 : vector<16x32xf32>
    %112 = arith.mulf %106, %111 : vector<16x32xf32>
    %113 = vector.extract_strided_slice %9 {offsets = [96, 0], sizes = [16, 128], strides = [1, 1]} : vector<128x128xf32> to vector<16x128xf32>
    %cst_21 = arith.constant dense<0.000000e+00> : vector<16x128xf32>
    %114 = tpu.matmul %112, %1, %cst_21 {dimension_numbers = #tpu.dot_dimension_numbers<[1], [0], [0], [1], [0, 0, 1, 1], [], []>} : vector<16x32xf32>, vector<32x128xf32>, vector<16x128xf32> -> vector<16x128xf32>
    %115 = arith.addf %113, %114 : vector<16x128xf32>
    %116 = arith.negf %115 : vector<16x128xf32>
    %117 = math.exp %116 : vector<16x128xf32>
    %cst_22 = arith.constant 1.000000e+00 : f32
    %118 = vector.broadcast %cst_22 : f32 to vector<16x128xf32>
    %119 = arith.addf %118, %117 : vector<16x128xf32>
    %120 = arith.divf %118, %119 : vector<16x128xf32>
    %121 = vector.extract_strided_slice %115 {offsets = [0, 96], sizes = [16, 32], strides = [1, 1]} : vector<16x128xf32> to vector<16x32xf32>
    %122 = math.tanh %121 : vector<16x32xf32>
    %123 = vector.extract_strided_slice %120 {offsets = [0, 0], sizes = [16, 32], strides = [1, 1]} : vector<16x128xf32> to vector<16x32xf32>
    %124 = vector.extract_strided_slice %120 {offsets = [0, 32], sizes = [16, 32], strides = [1, 1]} : vector<16x128xf32> to vector<16x32xf32>
    %125 = vector.extract_strided_slice %120 {offsets = [0, 64], sizes = [16, 32], strides = [1, 1]} : vector<16x128xf32> to vector<16x32xf32>
    %126 = arith.mulf %123, %122 : vector<16x32xf32>
    %127 = arith.mulf %125, %110 : vector<16x32xf32>
    %128 = arith.addf %126, %127 : vector<16x32xf32>
    %129 = math.tanh %128 : vector<16x32xf32>
    %130 = arith.mulf %124, %129 : vector<16x32xf32>
    %131 = vector.extract_strided_slice %9 {offsets = [112, 0], sizes = [16, 128], strides = [1, 1]} : vector<128x128xf32> to vector<16x128xf32>
    %cst_23 = arith.constant dense<0.000000e+00> : vector<16x128xf32>
    %132 = tpu.matmul %130, %1, %cst_23 {dimension_numbers = #tpu.dot_dimension_numbers<[1], [0], [0], [1], [0, 0, 1, 1], [], []>} : vector<16x32xf32>, vector<32x128xf32>, vector<16x128xf32> -> vector<16x128xf32>
    %133 = arith.addf %131, %132 : vector<16x128xf32>
    %134 = arith.negf %133 : vector<16x128xf32>
    %135 = math.exp %134 : vector<16x128xf32>
    %cst_24 = arith.constant 1.000000e+00 : f32
    %136 = vector.broadcast %cst_24 : f32 to vector<16x128xf32>
    %137 = arith.addf %136, %135 : vector<16x128xf32>
    %138 = arith.divf %136, %137 : vector<16x128xf32>
    %139 = vector.extract_strided_slice %133 {offsets = [0, 96], sizes = [16, 32], strides = [1, 1]} : vector<16x128xf32> to vector<16x32xf32>
    %140 = math.tanh %139 : vector<16x32xf32>
    %141 = vector.extract_strided_slice %138 {offsets = [0, 0], sizes = [16, 32], strides = [1, 1]} : vector<16x128xf32> to vector<16x32xf32>
    %142 = vector.extract_strided_slice %138 {offsets = [0, 32], sizes = [16, 32], strides = [1, 1]} : vector<16x128xf32> to vector<16x32xf32>
    %143 = vector.extract_strided_slice %138 {offsets = [0, 64], sizes = [16, 32], strides = [1, 1]} : vector<16x128xf32> to vector<16x32xf32>
    %144 = arith.mulf %141, %140 : vector<16x32xf32>
    %145 = arith.mulf %143, %128 : vector<16x32xf32>
    %146 = arith.addf %144, %145 : vector<16x32xf32>
    %147 = math.tanh %146 : vector<16x32xf32>
    %148 = arith.mulf %142, %147 : vector<16x32xf32>
    %cst_25 = arith.constant dense<0.000000e+00> : vector<16x128xf32>
    %149 = tpu.matmul %148, %0, %cst_25 {dimension_numbers = #tpu.dot_dimension_numbers<[1], [0], [0], [1], [0, 0, 1, 1], [], []>} : vector<16x32xf32>, vector<32x128xf32>, vector<16x128xf32> -> vector<16x128xf32>
    %150 = vector.broadcast %4 : vector<1x128xf32> to vector<16x128xf32>
    %151 = arith.addf %149, %150 : vector<16x128xf32>
    %152 = arith.negf %151 : vector<16x128xf32>
    %153 = math.exp %152 : vector<16x128xf32>
    %cst_26 = arith.constant 1.000000e+00 : f32
    %154 = vector.broadcast %cst_26 : f32 to vector<16x128xf32>
    %155 = arith.addf %154, %153 : vector<16x128xf32>
    %156 = arith.divf %154, %155 : vector<16x128xf32>
    %157 = vector.extract_strided_slice %151 {offsets = [0, 96], sizes = [16, 32], strides = [1, 1]} : vector<16x128xf32> to vector<16x32xf32>
    %158 = math.tanh %157 : vector<16x32xf32>
    %159 = vector.extract_strided_slice %156 {offsets = [0, 0], sizes = [16, 32], strides = [1, 1]} : vector<16x128xf32> to vector<16x32xf32>
    %160 = vector.extract_strided_slice %156 {offsets = [0, 32], sizes = [16, 32], strides = [1, 1]} : vector<16x128xf32> to vector<16x32xf32>
    %161 = arith.mulf %159, %158 : vector<16x32xf32>
    %162 = math.tanh %161 : vector<16x32xf32>
    %163 = arith.mulf %160, %162 : vector<16x32xf32>
    %164 = vector.extract_strided_slice %163 {offsets = [0, 0], sizes = [8, 32], strides = [1, 1]} : vector<16x32xf32> to vector<8x32xf32>
    %165 = vector.extract_strided_slice %163 {offsets = [8, 0], sizes = [8, 32], strides = [1, 1]} : vector<16x32xf32> to vector<8x32xf32>
    %166 = arith.mulf %164, %165 : vector<8x32xf32>
    %167 = arith.subf %164, %165 : vector<8x32xf32>
    %168 = math.absf %167 : vector<8x32xf32>
    %c0_27 = arith.constant 0 : index
    %c0_28 = arith.constant 0 : index
    %169 = vector.load %arg6[%c0_27, %c0_28] : memref<64x32xf32, #tpu.memory_space<vmem>>, vector<32x32xf32>
    %c32 = arith.constant 32 : index
    %c0_29 = arith.constant 0 : index
    %170 = vector.load %arg6[%c32, %c0_29] : memref<64x32xf32, #tpu.memory_space<vmem>>, vector<32x32xf32>
    %cst_30 = arith.constant dense<0.000000e+00> : vector<8x32xf32>
    %171 = tpu.matmul %166, %169, %cst_30 {dimension_numbers = #tpu.dot_dimension_numbers<[1], [0], [0], [1], [0, 0, 1, 1], [], []>} : vector<8x32xf32>, vector<32x32xf32>, vector<8x32xf32> -> vector<8x32xf32>
    %cst_31 = arith.constant dense<0.000000e+00> : vector<8x32xf32>
    %172 = tpu.matmul %168, %170, %cst_31 {dimension_numbers = #tpu.dot_dimension_numbers<[1], [0], [0], [1], [0, 0, 1, 1], [], []>} : vector<8x32xf32>, vector<32x32xf32>, vector<8x32xf32> -> vector<8x32xf32>
    %173 = arith.addf %171, %172 : vector<8x32xf32>
    %c0_32 = arith.constant 0 : index
    %c0_33 = arith.constant 0 : index
    %174 = vector.load %arg7[%c0_32, %c0_33] : memref<1x32xf32, #tpu.memory_space<vmem>>, vector<1x32xf32>
    %175 = vector.broadcast %174 : vector<1x32xf32> to vector<8x32xf32>
    %176 = arith.addf %173, %175 : vector<8x32xf32>
    %177 = arith.negf %176 : vector<8x32xf32>
    %178 = math.exp %177 : vector<8x32xf32>
    %cst_34 = arith.constant 1.000000e+00 : f32
    %179 = vector.broadcast %cst_34 : f32 to vector<8x32xf32>
    %180 = arith.addf %179, %178 : vector<8x32xf32>
    %181 = arith.divf %179, %180 : vector<8x32xf32>
    %c0_35 = arith.constant 0 : index
    %c0_36 = arith.constant 0 : index
    %182 = vector.load %arg8[%c0_35, %c0_36] : memref<32x4xf32, #tpu.memory_space<vmem>>, vector<32x4xf32>
    %cst_37 = arith.constant dense<0.000000e+00> : vector<8x4xf32>
    %183 = tpu.matmul %181, %182, %cst_37 {dimension_numbers = #tpu.dot_dimension_numbers<[1], [0], [0], [1], [0, 0, 1, 1], [], []>} : vector<8x32xf32>, vector<32x4xf32>, vector<8x4xf32> -> vector<8x4xf32>
    %c0_38 = arith.constant 0 : index
    %c0_39 = arith.constant 0 : index
    %184 = vector.load %arg9[%c0_38, %c0_39] : memref<1x4xf32, #tpu.memory_space<vmem>>, vector<1x4xf32>
    %185 = vector.broadcast %184 : vector<1x4xf32> to vector<8x4xf32>
    %186 = arith.addf %183, %185 : vector<8x4xf32>
    %cst_40 = arith.constant dense<0xFF800000> : vector<8xf32>
    %187 = vector.multi_reduction <maximumf>, %186, %cst_40 [1] : vector<8x4xf32> to vector<8xf32>
    %188 = vector.shape_cast %187 : vector<8xf32> to vector<8x1xf32>
    %189 = vector.broadcast %188 : vector<8x1xf32> to vector<8x4xf32>
    %190 = arith.subf %186, %189 : vector<8x4xf32>
    %191 = math.exp %190 : vector<8x4xf32>
    %cst_41 = arith.constant dense<0.000000e+00> : vector<8xf32>
    %192 = vector.multi_reduction <add>, %191, %cst_41 [1] : vector<8x4xf32> to vector<8xf32>
    %193 = vector.shape_cast %192 : vector<8xf32> to vector<8x1xf32>
    %194 = math.log %193 : vector<8x1xf32>
    %195 = vector.broadcast %194 : vector<8x1xf32> to vector<8x4xf32>
    %196 = arith.subf %190, %195 : vector<8x4xf32>
    %c0_42 = arith.constant 0 : index
    %c0_43 = arith.constant 0 : index
    %197 = vector.load %arg10[%c0_42, %c0_43] : memref<8x4xf32, #tpu.memory_space<vmem>>, vector<8x4xf32>
    tpu.vector_store %arg10[%c0_42, %c0_43], %196 {strides = array<i32>} : memref<8x4xf32, #tpu.memory_space<vmem>>, vector<8x4xf32>,
    return
  }
  func.func @transform_0(%arg0: i32) -> (i32, i32, i32) {
    %c0_i32 = arith.constant 0 : i32
    %c0_i32_0 = arith.constant 0 : i32
    %c0_i32_1 = arith.constant 0 : i32
    return %arg0, %c0_i32, %c0_i32_0 : i32, i32, i32
  }
  func.func @transform_1(%arg0: i32) -> (i32, i32) {
    %c0_i32 = arith.constant 0 : i32
    %c0_i32_0 = arith.constant 0 : i32
    %c0_i32_1 = arith.constant 0 : i32
    return %c0_i32, %c0_i32_0 : i32, i32
  }
  func.func @transform_2(%arg0: i32) -> (i32, i32) {
    %c0_i32 = arith.constant 0 : i32
    %c0_i32_0 = arith.constant 0 : i32
    %c0_i32_1 = arith.constant 0 : i32
    return %c0_i32, %c0_i32_0 : i32, i32
  }
  func.func @transform_3(%arg0: i32) -> (i32, i32) {
    %c0_i32 = arith.constant 0 : i32
    %c0_i32_0 = arith.constant 0 : i32
    %c0_i32_1 = arith.constant 0 : i32
    return %c0_i32, %c0_i32_0 : i32, i32
  }
  func.func @transform_4(%arg0: i32) -> (i32, i32) {
    %c0_i32 = arith.constant 0 : i32
    %c0_i32_0 = arith.constant 0 : i32
    %c0_i32_1 = arith.constant 0 : i32
    return %c0_i32, %c0_i32_0 : i32, i32
  }
  func.func @transform_5(%arg0: i32) -> (i32, i32) {
    %c0_i32 = arith.constant 0 : i32
    %c0_i32_0 = arith.constant 0 : i32
    %c0_i32_1 = arith.constant 0 : i32
    return %c0_i32, %c0_i32_0 : i32, i32
  }
  func.func @transform_6(%arg0: i32) -> (i32, i32) {
    %c0_i32 = arith.constant 0 : i32
    %c0_i32_0 = arith.constant 0 : i32
    %c0_i32_1 = arith.constant 0 : i32
    return %c0_i32, %c0_i32_0 : i32, i32
  }
  func.func @transform_7(%arg0: i32) -> (i32, i32) {
    %c0_i32 = arith.constant 0 : i32
    %c0_i32_0 = arith.constant 0 : i32
    %c0_i32_1 = arith.constant 0 : i32
    return %c0_i32, %c0_i32_0 : i32, i32
  }
  func.func @transform_8(%arg0: i32) -> (i32, i32) {
    %c0_i32 = arith.constant 0 : i32
    %c0_i32_0 = arith.constant 0 : i32
    %c0_i32_1 = arith.constant 0 : i32
    return %c0_i32, %c0_i32_0 : i32, i32
  }
  func.func @transform_9(%arg0: i32) -> (i32, i32) {
    %c0_i32 = arith.constant 0 : i32
    %c0_i32_0 = arith.constant 0 : i32
    return %arg0, %c0_i32 : i32, i32
  }
}

</mosaic_0001>

<bundles_post_ra>
// kernel: pair_cross_lstm_forward.1
= control target key start
LH: loop header
LB: loop body
LE: loop exit
PB: predicated region body
PF: predicated region fallthrough
CT: control target
= control target key end

     0   :  { %s1937_s30 = smov 0   ;;  %s2273_s0 = inlined_call_operand.vmem [shape: f32[2,128,32], index: 0, kind: input, shape index: {}]   ;;  %s2274_s1 = inlined_call_operand.vmem [shape: f32[32,128], index: 1, kind: input, shape index: {}]   ;;  %s2275_s2 = inlined_call_operand.vmem [shape: f32[1,128], index: 2, kind: input, shape index: {}]   ;;  %s2276_s3 = inlined_call_operand.vmem [shape: f32[32,128], index: 3, kind: input, shape index: {}]   ;;  %s2277_s4 = inlined_call_operand.vmem [shape: f32[1,128], index: 4, kind: input, shape index: {}]   ;;  %s2278_s5 = inlined_call_operand.vmem [shape: f32[64,32], index: 5, kind: input, shape index: {}]   ;;  %s2279_s6 = inlined_call_operand.vmem [shape: f32[1,32], index: 6, kind: input, shape index: {}]   ;;  %s2280_s7 = inlined_call_operand.vmem [shape: f32[32,4], index: 7, kind: input, shape index: {}]   ;;  %s2281_s8 = inlined_call_operand.vmem [shape: f32[1,4], index: 8, kind: input, shape index: {}]   ;;  %s2282_s9 = inlined_call_operand.vmem [shape: f32[16,4], index: 9, kind: output, shape index: {}]  }
   0x1 LB: > { %s1634_s10 = sadd.s32 4294967295, %s1882_s30   ;;  %p1638_p0 = scmp.ge.s32.totalorder %s1882_s30, 1  ;;  %s1882_s30 = sphi %s1937_s30, %s19_s30  }
   0x2   : > { %p287_p1 = scmp.lt.s32.totalorder %s1882_s30, 3 }
   0x4   : > { %p288_p2 = pnand %p1638_p0, %p287_p1 }
   0x5   : > { %p322_p3 = scmp.lt.s32.totalorder (!%p288_p2), %s1634_s10, 1  ;;  %s1884_s27 = smov (!%p288_p2), 32  }
   0x6   : > { %291 = sbr.rel (%p288_p2) target bundleno = 5002 (0x138a), region = 56  ;;  %s1885_s28 = smov (!%p288_p2), 64  }
   0x7   : > { %s1886_s18 = smov (!%p288_p2), 96  }
   0xb   : > { %v1948_v0 = vld [vmem:[%s2274_s1 + $0x18] sm:$0xff]  ;;  %v1953_v1 = vld [vmem:[%s2274_s1 + $0x10] sm:$0xff]  ;;  %v1960_v2 = vld [vmem:[%s2274_s1 + $0x8] sm:$0xff]  ;;  %s2284_s10 = smov (!%p322_p3, %s1634_s10), 1  ;;  %vm361_vm0 = vcmask 261120  }
   0xc   : > { %422 = vmatpush.msra.mxu0 %v1948_v0  ;;  %1699 = vmatpush.msra.mxu1 %v1948_v0  ;;  %v1971_v3 = vld [vmem:[%s2274_s1] sm:$0xff]  ;;  %s1698_s19 = sshll.u32 %s2284_s10, 7  ;;  %v2013_v49 = vld [vmem:[%s2276_s3 + $0x18] sm:$0xff]  ;;  %v2019_v50 = vld [vmem:[%s2276_s3 + $0x10] sm:$0xff] }
   0xd   : > { %1700 = vmatpush.msra.mxu2 %v1948_v0  ;;  %1701 = vmatpush.msra.mxu3 %v1948_v0  ;;  %s1980_s22 = scalar_lea.vmem %s2273_s0, %s1698_s19  ;;  %v339_v6 = vld [vmem:[%s2275_s2] sm:$0x1]  ;;  %v2028_v52 = vld [vmem:[%s2276_s3 + $0x8] sm:$0xff] }
   0xe   : > { %423 = vmatpush.msra.mxu0 %v1953_v1  ;;  %1702 = vmatpush.msra.mxu1 %v1953_v1  ;;  %v342_v4 = vld [vmem:[%s1980_s22] sm:$0xff]  ;;  %v343_v5 = vld [vmem:[%s1980_s22 + $0x8] sm:$0xff]  ;;  %v344_v51 = vld [vmem:[%s1980_s22 + $0x10] sm:$0xff] }
   0xf   : > { %1703 = vmatpush.msra.mxu2 %v1953_v1  ;;  %1704 = vmatpush.msra.mxu3 %v1953_v1  ;;  %v340_v7 = vld [vmem:[%s2277_s4] sm:$0x1]  ;;  %v351_v48 = vld [vmem:[%s1980_s22 + $0x48] sm:$0xff]  ;;  %v345_v58 = vld [vmem:[%s1980_s22 + $0x18] sm:$0xff] }
  0x10   : > { %424 = vmatpush.msra.mxu0 %v1960_v2  ;;  %1705 = vmatpush.msra.mxu1 %v1960_v2  ;;  %v341_v8 = vadd.f32 %v340_v7, %v339_v6  ;;  %v2036_v53 = vld [vmem:[%s2276_s3] sm:$0xff] }
  0x11   : > { %1706 = vmatpush.msra.mxu2 %v1960_v2  ;;  %1707 = vmatpush.msra.mxu3 %v1960_v2 }
  0x12   : > { %425 = vmatpush.msra.mxu0 %v1971_v3  ;;  %1708 = vmatpush.msra.mxu1 %v1971_v3  ;;  %v1999_v9 = vperm.slane %v341_v8, 0 }
  0x13   : > { %1642 = vmatmul.msk.f32.vlgmr.msra.gmra.mxu0 %vm361_vm0, %v342_v4  ;;  %1709 = vmatpush.msra.mxu2 %v1971_v3 }
  0x14   : > { %1710 = vmatpush.msra.mxu3 %v1971_v3  ;;  %1651 = vmatmul.msk.f32.vlgmr.msra.gmra.mxu1 %vm361_vm0, %v351_v48 }
  0x15   : > { %676 = vmatpush.msrb.mxu2 %v2013_v49  ;;  %559 = vmatpush.msrb.mxu1 %v2013_v49 }
  0x16   : > { %793 = vmatpush.msrb.mxu3 %v2013_v49 }
  0x17   : > { %677 = vmatpush.msrb.mxu2 %v2019_v50  ;;  %560 = vmatpush.msrb.mxu1 %v2019_v50 }
  0x18   : > { %794 = vmatpush.msrb.mxu3 %v2019_v50 }
  0x19   : > { %678 = vmatpush.msrb.mxu2 %v2028_v52  ;;  %561 = vmatpush.msrb.mxu1 %v2028_v52 }
  0x1a   : > { %795 = vmatpush.msrb.mxu3 %v2028_v52 }
  0x1b   : > { %1643 = vmatmul.msk.f32.gmra.mxu0 %vm361_vm0, %v343_v5  ;;  %679 = vmatpush.msrb.mxu2 %v2036_v53 }
  0x1c   : > { %562 = vmatpush.msrb.mxu1 %v2036_v53  ;;  %796 = vmatpush.msrb.mxu3 %v2036_v53 }
  0x1e   : > { %910 = vmatpush.msra.mxu1 %v2013_v49 }
  0x20   : > { %911 = vmatpush.msra.mxu1 %v2019_v50 }
  0x22   : > { %912 = vmatpush.msra.mxu1 %v2028_v52 }
  0x23   : > { %1644 = vmatmul.msk.f32.gmra.mxu0 %vm361_vm0, %v344_v51 }
  0x24   : > { %913 = vmatpush.msra.mxu1 %v2036_v53 }
  0x2b   : > { %1645 = vmatmul.msk.f32.gmra.mxu0 %vm361_vm0, %v345_v58  ;;  %v353_v58 = vld [vmem:[%s1980_s22 + $0x58] sm:$0xff] }
  0x90   : > { %v427_v10 = vpop.f32.mrf.mxu0 }
  0x91   : > { %v428_v11 = vadd.f32 %v427_v10, %v1999_v9  ;;  %v2059_v61 = vpop.f32.mrf.mxu1 }
  0x93   : > { %1724 = vtanh.f32 %v428_v11  ;;  %v1658_v16 = vmul.f32 -1.442695, %v428_v11 }
  0x98   : > { %v430_v12 = vpop.f32.mrf.mxu0 }
  0x99   : > { %v1725_v13 = vpop.eup %1724  ;;  %v431_v14 = vadd.f32 %v430_v12, %v1999_v9 }
  0x9a   : > { %517 = vrot.lane.b32.xlu0 %v1725_v13, %s1884_s27 }
  0x9b   : > { %1726 = vtanh.f32 %v431_v14  ;;  %v1659_v17 = vmul.f32 -1.442695, %v431_v14 }
  0x9c   : > { %1728 = vpow2.f32 %v1658_v16 }
  0x9d   : > { %1730 = vpow2.f32 %v1659_v17 }
  0xa0   : > { %v433_v62 = vpop.f32.mrf.mxu0 }
  0xa1   : > { %v1727_v15 = vpop.eup %1726  ;;  %v434_v63 = vadd.f32 %v433_v62, %v1999_v9  ;;  %v354_v62 = vld [vmem:[%s1980_s22 + $0x60] sm:$0xff] }
  0xa2   : > { %519 = vrot.lane.b32.xlu0 %v1727_v15, %s1884_s27  ;;  %v1729_v18 = vpop.eup %1728 }
  0xa3   : > { %v481_v19 = vadd.f32 1.0, %v1729_v18  ;;  %v1731_v20 = vpop.eup %1730 }
  0xa4   : > { %v482_v21 = vadd.f32 1.0, %v1731_v20 }
  0xa5   : > { %1732 = vrcp.f32 %v481_v19  ;;  %v494_v30 = vand.u32 2147483648, %v481_v19  ;;  %vm488_vm2 = vweird.f32 %v481_v19  ;;  %v492_v31 = vand.u32 2147483647, %v481_v19 }
  0xa6   : > { %1734 = vrcp.f32 %v482_v21  ;;  %vm503_vm5 = vweird.f32 %v482_v21  ;;  %v509_v37 = vand.u32 2147483648, %v482_v21  ;;  %v507_v40 = vand.u32 2147483647, %v482_v21 }
  0xa7   : > { %v495_v34 = vor.u32 1.1754944e-38, %v494_v30  ;;  %vm493_vm4 = vcmp.eq.f32.partialorder %v492_v31, 8.507059e+37 }
  0xa8   : > { %v510_v41 = vor.u32 1.1754944e-38, %v509_v37  ;;  %vm508_vm8 = vcmp.eq.f32.partialorder %v507_v40, 8.507059e+37  ;;  %v436_v6 = vpop.f32.mrf.mxu0 }
  0xa9   : > { %v437_v8 = vadd.f32 %v436_v6, %v1999_v9  ;;  %v347_v6 = vld [vmem:[%s1980_s22 + $0x28] sm:$0xff] }
  0xab   : > { %v1733_v22 = vpop.eup %1732 }
  0xac   : > { %v484_v23 = vmul.f32 %v1733_v22, %v481_v19  ;;  %v1735_v25 = vpop.eup %1734  ;;  %vm489_vm1 = vweird.f32 %v1733_v22 }
  0xad   : > { %v499_v27 = vmul.f32 %v1735_v25, %v482_v21  ;;  %vm490_vm3 = vmor %vm488_vm2, %vm489_vm1  ;;  %vm504_vm6 = vweird.f32 %v1735_v25 }
  0xae   : > { %v485_v24 = vsub.f32 1.0, %v484_v23  ;;  %vm505_vm7 = vmor %vm503_vm5, %vm504_vm6 }
  0xaf   : > { %v500_v29 = vsub.f32 1.0, %v499_v27 }
  0xb0   : > { %v486_v26 = vmul.f32 %v1733_v22, %v485_v24 }
  0xb1   : > { %v501_v33 = vmul.f32 %v1735_v25, %v500_v29 }
  0xb2   : > { %v487_v28 = vadd.f32 %v1733_v22, %v486_v26 }
  0xb3   : > { %v502_v39 = vadd.f32 %v1735_v25, %v501_v33 }
  0xb4   : > { %v491_v32 = vsel %vm490_vm3, %v1733_v22, %v487_v28 }
  0xb5   : > { %v496_v36 = vsel %vm493_vm4, %v495_v34, %v491_v32  ;;  %v506_v42 = vsel %vm505_vm7, %v1735_v25, %v502_v39 }
  0xb6   : > { %v511_v43 = vsel %vm508_vm8, %v510_v41, %v506_v42 }
 0x10c   : > { %v518_v35 = vpop.permute.xlu0 %517 }
 0x10d   : > { %v523_v38 = vmul.f32 %v518_v35, %v496_v36 }
 0x10f   : > { %1736 = vtanh.f32 %v523_v38  ;;  %624 = vrot.lane.b32.xlu0 %v523_v38, %s1885_s28 }
 0x114   : > { %v520_v44 = vpop.permute.xlu0 %519 }
 0x115   : > { %v1737_v45 = vpop.eup %1736  ;;  %v524_v46 = vmul.f32 %v520_v44, %v511_v43 }
 0x116   : > { %529 = vrot.lane.b32.xlu1 %v1737_v45, %s1884_s27 }
 0x117   : > { %1738 = vtanh.f32 %v524_v46 }
 0x11d   : > { %v1739_v47 = vpop.eup %1738 }
 0x11e   : > { %531 = vrot.lane.b32.xlu1 %v1739_v47, %s1884_s27 }
 0x126   : > { %626 = vrot.lane.b32.xlu1 %v524_v46, %s1885_s28 }
 0x181   : > { %v625_v30 = vpop.permute.xlu0 %624 }
 0x188   : > { %v530_v54 = vpop.permute.xlu1 %529 }
 0x189   : > { %v535_v55 = vmul.f32 %v530_v54, %v496_v36 }
 0x18b   : > { %539 = vrot.lane.b32.xlu2 %v535_v55, %s1886_s18 }
 0x190   : > { %v532_v56 = vpop.permute.xlu1 %531 }
 0x191   : > { %v536_v57 = vmul.f32 %v532_v56, %v511_v43 }
 0x193   : > { %541 = vrot.lane.b32.xlu2 %v536_v57, %s1886_s18  ;;  %v352_v57 = vld [vmem:[%s1980_s22 + $0x50] sm:$0xff] }
 0x194   : > { %1652 = vmatmul.msk.f32.vlgmr.msra.gmra.mxu2 %vm361_vm0, %v352_v57 }
 0x195   : > { %1027 = vmatpush.msra.mxu2 %v2013_v49 }
 0x197   : > { %1028 = vmatpush.msra.mxu2 %v2019_v50 }
 0x198   : > { %v627_v40 = vpop.permute.xlu1 %626 }
 0x199   : > { %1029 = vmatpush.msra.mxu2 %v2028_v52 }
 0x19b   : > { %1030 = vmatpush.msra.mxu2 %v2036_v53 }
 0x19c   : > { %1653 = vmatmul.msk.f32.gmra.mxu2 %vm361_vm0, %v353_v58 }
 0x1a4   : > { %1654 = vmatmul.msk.f32.gmra.mxu2 %vm361_vm0, %v354_v62 }
 0x1e5   : > { %v540_v59 = vpop.permute.xlu2 %539 }
 0x1e6   : > { %1660 = vmatmul.msk.f32.vlgmr.msrb.gmra.mxu1 %vm361_vm0, %v540_v59 }
 0x1e7   : > { %1261 = vmatpush.msrb.mxu1 %v2013_v49 }
 0x1e9   : > { %1262 = vmatpush.msrb.mxu1 %v2019_v50 }
 0x1eb   : > { %1263 = vmatpush.msrb.mxu1 %v2028_v52 }
 0x1ed   : > { %v542_v60 = vpop.permute.xlu2 %541  ;;  %1264 = vmatpush.msrb.mxu1 %v2036_v53 }
 0x1ee   : > { %1661 = vmatmul.msk.f32.gmra.mxu1 %vm361_vm0, %v542_v60 }
 0x263   : > { %v564_v4 = vpop.f32.mrf.mxu1 }
 0x264   : > { %v570_v5 = vadd.f32 %v564_v4, %v434_v63 }
 0x266   : > { %v1662_v7 = vmul.f32 -1.442695, %v570_v5  ;;  %1740 = vtanh.f32 %v570_v5  ;;  %v346_v5 = vld [vmem:[%s1980_s22 + $0x20] sm:$0xff] }
 0x267   : > { %1646 = vmatmul.msk.f32.gmra.mxu0 %vm361_vm0, %v346_v5  ;;  %v356_v5 = vld [vmem:[%s1980_s22 + $0x70] sm:$0xff] }
 0x268   : > { %1742 = vpow2.f32 %v1662_v7 }
 0x26b   : > { %v567_v10 = vpop.f32.mrf.mxu1 }
 0x26c   : > { %v1741_v11 = vpop.eup %1740  ;;  %v571_v12 = vadd.f32 %v567_v10, %v437_v8  ;;  %v2093_v10 = vpop.f32.mrf.mxu2 }
 0x26d   : > { %614 = vrot.lane.b32.xlu2 %v1741_v11, %s1884_s27 }
 0x26e   : > { %v1743_v13 = vpop.eup %1742  ;;  %v1663_v14 = vmul.f32 -1.442695, %v571_v12  ;;  %1744 = vtanh.f32 %v571_v12 }
 0x26f   : > { %v578_v15 = vadd.f32 1.0, %v1743_v13  ;;  %1647 = vmatmul.msk.f32.gmra.mxu0 %vm361_vm0, %v347_v6 }
 0x270   : > { %1746 = vpow2.f32 %v1663_v14 }
 0x271   : > { %1748 = vrcp.f32 %v578_v15  ;;  %v591_v22 = vand.u32 2147483648, %v578_v15  ;;  %v589_v24 = vand.u32 2147483647, %v578_v15  ;;  %vm585_vm10 = vweird.f32 %v578_v15 }
 0x273   : > { %v592_v27 = vor.u32 1.1754944e-38, %v591_v22  ;;  %vm590_vm12 = vcmp.eq.f32.partialorder %v589_v24, 8.507059e+37 }
 0x274   : > { %v1745_v16 = vpop.eup %1744  ;;  %v2095_v11 = vpop.f32.mrf.mxu2 }
 0x275   : > { %616 = vrot.lane.b32.xlu1 %v1745_v16, %s1884_s27 }
 0x276   : > { %v1747_v17 = vpop.eup %1746 }
 0x277   : > { %v1749_v18 = vpop.eup %1748  ;;  %v579_v19 = vadd.f32 1.0, %v1747_v17 }
 0x278   : > { %v581_v20 = vmul.f32 %v1749_v18, %v578_v15  ;;  %vm586_vm9 = vweird.f32 %v1749_v18 }
 0x279   : > { %1750 = vrcp.f32 %v579_v19  ;;  %vm587_vm11 = vmor %vm585_vm10, %vm586_vm9  ;;  %v606_v34 = vand.u32 2147483648, %v579_v19  ;;  %v604_v36 = vand.u32 2147483647, %v579_v19  ;;  %vm600_vm14 = vweird.f32 %v579_v19 }
 0x27a   : > { %v582_v21 = vsub.f32 1.0, %v581_v20 }
 0x27b   : > { %v607_v38 = vor.u32 1.1754944e-38, %v606_v34  ;;  %vm605_vm1 = vcmp.eq.f32.partialorder %v604_v36, 8.507059e+37 }
 0x27c   : > { %v583_v23 = vmul.f32 %v1749_v18, %v582_v21  ;;  %v2097_v12 = vpop.f32.mrf.mxu2 }
 0x27e   : > { %v584_v25 = vadd.f32 %v1749_v18, %v583_v23 }
 0x27f   : > { %v1751_v26 = vpop.eup %1750 }
 0x280   : > { %v596_v28 = vmul.f32 %v1751_v26, %v579_v19  ;;  %v588_v29 = vsel %vm587_vm11, %v1749_v18, %v584_v25  ;;  %vm601_vm13 = vweird.f32 %v1751_v26 }
 0x281   : > { %v593_v31 = vsel %vm590_vm12, %v592_v27, %v588_v29  ;;  %vm602_vm15 = vmor %vm600_vm14, %vm601_vm13 }
 0x282   : > { %v630_v32 = vmul.f32 %v625_v30, %v593_v31  ;;  %v597_v33 = vsub.f32 1.0, %v596_v28 }
 0x284   : > { %634 = vrot.lane.b32.xlu0 %v630_v32, %s1885_s28  ;;  %v598_v35 = vmul.f32 %v1751_v26, %v597_v33 }
 0x286   : > { %v599_v37 = vadd.f32 %v1751_v26, %v598_v35 }
 0x288   : > { %v603_v39 = vsel %vm602_vm15, %v1751_v26, %v599_v37 }
 0x289   : > { %v608_v41 = vsel %vm605_vm1, %v607_v38, %v603_v39 }
 0x28a   : > { %v631_v42 = vmul.f32 %v627_v40, %v608_v41 }
 0x28c   : > { %636 = vrot.lane.b32.xlu2 %v631_v42, %s1885_s28 }
 0x2c7   : > { %v615_v43 = vpop.permute.xlu2 %614 }
 0x2c8   : > { %v620_v51 = vmul.f32 %v615_v43, %v593_v31 }
 0x2e4   : > { %v439_v13 = vpop.f32.mrf.mxu0 }
 0x2e5   : > { %v440_v14 = vadd.f32 %v439_v13, %v1999_v9 }
 0x2e6   : > { %v637_v46 = vpop.permute.xlu2 %636 }
 0x2e7   : > { %v617_v44 = vpop.permute.xlu1 %616 }
 0x2e8   : > { %v621_v45 = vmul.f32 %v617_v44, %v608_v41 }
 0x2ea   : > { %v641_v47 = vadd.f32 %v637_v46, %v621_v45 }
 0x2ec   : > { %1752 = vtanh.f32 %v641_v47 }
 0x2f2   : > { %v1753_v48 = vpop.eup %1752 }
 0x2f3   : > { %648 = vrot.lane.b32.xlu1 %v1753_v48, %s1884_s27 }
 0x2f6   : > { %v635_v54 = vpop.permute.xlu0 %634 }
 0x2f7   : > { %v640_v55 = vadd.f32 %v635_v54, %v620_v51 }
 0x2f9   : > { %1754 = vtanh.f32 %v640_v55 }
 0x2fb   : > { %741 = vrot.lane.b32.xlu1 %v640_v55, %s1885_s28 }
 0x2ff   : > { %v1755_v56 = vpop.eup %1754 }
 0x300   : > { %646 = vrot.lane.b32.xlu0 %v1755_v56, %s1884_s27 }
 0x365   : > { %v649_v59 = vpop.permute.xlu1 %648 }
 0x366   : > { %v653_v60 = vmul.f32 %v649_v59, %v608_v41 }
 0x368   : > { %658 = vrot.lane.b32.xlu0 %v653_v60, %s1886_s18 }
 0x36d   : > { %v742_v34 = vpop.permute.xlu1 %741 }
 0x372   : > { %v647_v63 = vpop.permute.xlu0 %646 }
 0x373   : > { %v652_v4 = vmul.f32 %v647_v63, %v593_v31 }
 0x375   : > { %656 = vrot.lane.b32.xlu2 %v652_v4, %s1886_s18  ;;  %v355_v4 = vld [vmem:[%s1980_s22 + $0x68] sm:$0xff] }
 0x376   : > { %1655 = vmatmul.msk.f32.vlgmr.msra.gmra.mxu3 %vm361_vm0, %v355_v4 }
 0x377   : > { %1144 = vmatpush.msra.mxu3 %v2013_v49  ;;  %v357_v49 = vld [vmem:[%s1980_s22 + $0x78] sm:$0xff] }
 0x379   : > { %1145 = vmatpush.msra.mxu3 %v2019_v50  ;;  %v348_v50 = vld [vmem:[%s1980_s22 + $0x30] sm:$0xff] }
 0x37a   : > { %1648 = vmatmul.msk.f32.gmra.mxu0 %vm361_vm0, %v348_v50  ;;  %v350_v50 = vld [vmem:[%s1980_s22 + $0x40] sm:$0xff] }
 0x37b   : > { %1146 = vmatpush.msra.mxu3 %v2028_v52  ;;  %v349_v52 = vld [vmem:[%s1980_s22 + $0x38] sm:$0xff] }
 0x37d   : > { %743 = vrot.lane.b32.xlu2 %v641_v47, %s1885_s28  ;;  %1147 = vmatpush.msra.mxu3 %v2036_v53 }
 0x37e   : > { %1656 = vmatmul.msk.f32.gmra.mxu3 %vm361_vm0, %v356_v5 }
 0x382   : > { %1649 = vmatmul.msk.f32.gmra.mxu0 %vm361_vm0, %v349_v52 }
 0x386   : > { %1657 = vmatmul.msk.f32.gmra.mxu3 %vm361_vm0, %v357_v49 }
 0x38a   : > { %1650 = vmatmul.msk.f32.gmra.mxu0 %vm361_vm0, %v350_v50 }
 0x3cf   : > { %v657_v7 = vpop.permute.xlu2 %656 }
 0x3d0   : > { %1664 = vmatmul.msk.f32.vlgmr.msrb.gmra.mxu2 %vm361_vm0, %v657_v7 }
 0x3d1   : > { %1378 = vmatpush.msrb.mxu2 %v1948_v0 }
 0x3d3   : > { %1379 = vmatpush.msrb.mxu2 %v1953_v1  ;;  %v442_v1 = vpop.f32.mrf.mxu0 }
 0x3d5   : > { %1380 = vmatpush.msrb.mxu2 %v1960_v2  ;;  %v443_v2 = vadd.f32 %v442_v1, %v1999_v9 }
 0x3d7   : > { %1381 = vmatpush.msrb.mxu2 %v1971_v3  ;;  %v744_v46 = vpop.permute.xlu2 %743 }
 0x3da   : > { %v659_v8 = vpop.permute.xlu0 %658 }
 0x3db   : > { %1665 = vmatmul.msk.f32.gmra.mxu2 %vm361_vm0, %v659_v8 }
 0x3f7   : > { %v445_v1 = vpop.f32.mrf.mxu0 }
 0x453   : > { %v681_v15 = vpop.f32.mrf.mxu2 }
 0x454   : > { %v687_v0 = vadd.f32 %v681_v15, %v440_v14  ;;  %v2127_v15 = vpop.f32.mrf.mxu3 }
 0x456   : > { %v1666_v16 = vmul.f32 -1.442695, %v687_v0  ;;  %1756 = vtanh.f32 %v687_v0 }
 0x458   : > { %1758 = vpow2.f32 %v1666_v16 }
 0x45c   : > { %v1757_v3 = vpop.eup %1756  ;;  %v2129_v0 = vpop.f32.mrf.mxu3 }
 0x45d   : > { %731 = vrot.lane.b32.xlu0 %v1757_v3, %s1884_s27 }
 0x45e   : > { %v1759_v17 = vpop.eup %1758  ;;  %v684_v18 = vpop.f32.mrf.mxu2 }
 0x45f   : > { %v695_v19 = vadd.f32 1.0, %v1759_v17  ;;  %v688_v20 = vadd.f32 %v684_v18, %v443_v2  ;;  %v446_v2 = vadd.f32 %v445_v1, %v1999_v9  ;;  %v448_v18 = vpop.f32.mrf.mxu0 }
 0x461   : > { %1760 = vrcp.f32 %v695_v19  ;;  %v1667_v21 = vmul.f32 -1.442695, %v688_v20  ;;  %v708_v28 = vand.u32 2147483648, %v695_v19  ;;  %v706_v30 = vand.u32 2147483647, %v695_v19 }
 0x462   : > { %1762 = vtanh.f32 %v688_v20  ;;  %vm702_vm3 = vweird.f32 %v695_v19  ;;  %v449_v20 = vadd.f32 %v448_v18, %v1999_v9 }
 0x463   : > { %1764 = vpow2.f32 %v1667_v21  ;;  %v709_v32 = vor.u32 1.1754944e-38, %v708_v28  ;;  %vm707_vm5 = vcmp.eq.f32.partialorder %v706_v30, 8.507059e+37 }
 0x464   : > { %v2131_v16 = vpop.f32.mrf.mxu3 }
 0x467   : > { %v1761_v22 = vpop.eup %1760 }
 0x468   : > { %v1763_v23 = vpop.eup %1762  ;;  %v698_v24 = vmul.f32 %v1761_v22, %v695_v19  ;;  %vm703_vm2 = vweird.f32 %v1761_v22 }
 0x469   : > { %v1765_v25 = vpop.eup %1764  ;;  %733 = vrot.lane.b32.xlu2 %v1763_v23, %s1884_s27  ;;  %vm704_vm4 = vmor %vm702_vm3, %vm703_vm2 }
 0x46a   : > { %v696_v26 = vadd.f32 1.0, %v1765_v25  ;;  %v699_v27 = vsub.f32 1.0, %v698_v24 }
 0x46c   : > { %1766 = vrcp.f32 %v696_v26  ;;  %v700_v29 = vmul.f32 %v1761_v22, %v699_v27  ;;  %v723_v40 = vand.u32 2147483648, %v696_v26  ;;  %v721_v42 = vand.u32 2147483647, %v696_v26 }
 0x46d   : > { %vm717_vm7 = vweird.f32 %v696_v26 }
 0x46e   : > { %v701_v31 = vadd.f32 %v1761_v22, %v700_v29  ;;  %v724_v44 = vor.u32 1.1754944e-38, %v723_v40  ;;  %vm722_vm9 = vcmp.eq.f32.partialorder %v721_v42, 8.507059e+37 }
 0x470   : > { %v705_v33 = vsel %vm704_vm4, %v1761_v22, %v701_v31 }
 0x471   : > { %v710_v35 = vsel %vm707_vm5, %v709_v32, %v705_v33 }
 0x472   : > { %v1767_v36 = vpop.eup %1766  ;;  %v747_v37 = vmul.f32 %v742_v34, %v710_v35 }
 0x473   : > { %v713_v38 = vmul.f32 %v1767_v36, %v696_v26  ;;  %vm718_vm6 = vweird.f32 %v1767_v36 }
 0x474   : > { %751 = vrot.lane.b32.xlu1 %v747_v37, %s1885_s28  ;;  %vm719_vm8 = vmor %vm717_vm7, %vm718_vm6 }
 0x475   : > { %v714_v39 = vsub.f32 1.0, %v713_v38 }
 0x477   : > { %v715_v41 = vmul.f32 %v1767_v36, %v714_v39 }
 0x479   : > { %v716_v43 = vadd.f32 %v1767_v36, %v715_v41 }
 0x47b   : > { %v720_v45 = vsel %vm719_vm8, %v1767_v36, %v716_v43 }
 0x47c   : > { %v725_v47 = vsel %vm722_vm9, %v724_v44, %v720_v45 }
 0x47d   : > { %v748_v48 = vmul.f32 %v744_v46, %v725_v47 }
 0x47f   : > { %753 = vrot.lane.b32.xlu0 %v748_v48, %s1885_s28 }
 0x4c3   : > { %v734_v57 = vpop.permute.xlu2 %733 }
 0x4c4   : > { %v738_v59 = vmul.f32 %v734_v57, %v725_v47 }
 0x4cf   : > { %v732_v51 = vpop.permute.xlu0 %731 }
 0x4d0   : > { %v737_v54 = vmul.f32 %v732_v51, %v710_v35 }
 0x4e6   : > { %v752_v55 = vpop.permute.xlu1 %751 }
 0x4e7   : > { %v757_v56 = vadd.f32 %v752_v55, %v737_v54 }
 0x4e9   : > { %1768 = vtanh.f32 %v757_v56 }
 0x4ef   : > { %v1769_v58 = vpop.eup %1768 }
 0x4f0   : > { %763 = vrot.lane.b32.xlu1 %v1769_v58, %s1884_s27 }
 0x4f1   : > { %v754_v60 = vpop.permute.xlu0 %753 }
 0x4f2   : > { %v758_v62 = vadd.f32 %v754_v60, %v738_v59 }
 0x4f4   : > { %1770 = vtanh.f32 %v758_v62 }
 0x4fa   : > { %v1771_v63 = vpop.eup %1770 }
 0x4fb   : > { %765 = vrot.lane.b32.xlu2 %v1771_v63, %s1884_s27 }
 0x503   : > { %858 = vrot.lane.b32.xlu2 %v757_v56, %s1885_s28 }
 0x555   : > { %v766_v6 = vpop.permute.xlu2 %765 }
 0x556   : > { %v770_v7 = vmul.f32 %v766_v6, %v725_v47 }
 0x558   : > { %775 = vrot.lane.b32.xlu1 %v770_v7, %s1886_s18 }
 0x55d   : > { %v859_v41 = vpop.permute.xlu2 %858 }
 0x562   : > { %v764_v8 = vpop.permute.xlu1 %763 }
 0x563   : > { %v769_v13 = vmul.f32 %v764_v8, %v710_v35 }
 0x565   : > { %773 = vrot.lane.b32.xlu0 %v769_v13, %s1886_s18 }
 0x56d   : > { %860 = vrot.lane.b32.xlu0 %v758_v62, %s1885_s28 }
 0x5ca   : > { %v776_v14 = vpop.permute.xlu1 %775 }
 0x5d7   : > { %v774_v53 = vpop.permute.xlu0 %773 }
 0x5d8   : > { %1668 = vmatmul.msk.f32.vlgmr.msrb.gmra.mxu3 %vm361_vm0, %v774_v53 }
 0x5df   : > { %v861_v55 = vpop.permute.xlu0 %860 }
 0x5e0   : > { %1669 = vmatmul.msk.f32.gmra.mxu3 %vm361_vm0, %v776_v14 }
 0x65b   : > { %v798_v3 = vpop.f32.mrf.mxu3 }
 0x65c   : > { %v804_v17 = vadd.f32 %v798_v3, %v446_v2  ;;  %v451_v2 = vpop.f32.mrf.mxu0 }
 0x65d   : > { %v452_v3 = vadd.f32 %v451_v2, %v1999_v9 }
 0x65e   : > { %v1670_v19 = vmul.f32 -1.442695, %v804_v17  ;;  %1772 = vtanh.f32 %v804_v17 }
 0x660   : > { %1774 = vpow2.f32 %v1670_v19 }
 0x663   : > { %v801_v21 = vpop.f32.mrf.mxu3 }
 0x664   : > { %v1773_v22 = vpop.eup %1772  ;;  %v805_v23 = vadd.f32 %v801_v21, %v449_v20 }
 0x665   : > { %848 = vrot.lane.b32.xlu1 %v1773_v22, %s1884_s27 }
 0x666   : > { %v1775_v24 = vpop.eup %1774  ;;  %v1671_v25 = vmul.f32 -1.442695, %v805_v23  ;;  %1776 = vtanh.f32 %v805_v23 }
 0x667   : > { %v812_v26 = vadd.f32 1.0, %v1775_v24 }
 0x668   : > { %1778 = vpow2.f32 %v1671_v25 }
 0x669   : > { %1780 = vrcp.f32 %v812_v26  ;;  %v825_v33 = vand.u32 2147483648, %v812_v26  ;;  %v823_v35 = vand.u32 2147483647, %v812_v26  ;;  %vm819_vm11 = vweird.f32 %v812_v26 }
 0x66b   : > { %v826_v38 = vor.u32 1.1754944e-38, %v825_v33  ;;  %vm824_vm13 = vcmp.eq.f32.partialorder %v823_v35, 8.507059e+37 }
 0x66c   : > { %v1777_v27 = vpop.eup %1776 }
 0x66d   : > { %850 = vrot.lane.b32.xlu0 %v1777_v27, %s1884_s27 }
 0x66e   : > { %v1779_v28 = vpop.eup %1778 }
 0x66f   : > { %v1781_v29 = vpop.eup %1780  ;;  %v813_v30 = vadd.f32 1.0, %v1779_v28 }
 0x670   : > { %v815_v31 = vmul.f32 %v1781_v29, %v812_v26  ;;  %vm820_vm10 = vweird.f32 %v1781_v29 }
 0x671   : > { %1782 = vrcp.f32 %v813_v30  ;;  %vm821_vm12 = vmor %vm819_vm11, %vm820_vm10  ;;  %v840_v45 = vand.u32 2147483648, %v813_v30  ;;  %v838_v47 = vand.u32 2147483647, %v813_v30  ;;  %vm834_vm15 = vweird.f32 %v813_v30 }
 0x672   : > { %v816_v32 = vsub.f32 1.0, %v815_v31 }
 0x673   : > { %v841_v51 = vor.u32 1.1754944e-38, %v840_v45  ;;  %vm839_vm2 = vcmp.eq.f32.partialorder %v838_v47, 8.507059e+37 }
 0x674   : > { %v817_v34 = vmul.f32 %v1781_v29, %v816_v32 }
 0x676   : > { %v818_v36 = vadd.f32 %v1781_v29, %v817_v34 }
 0x677   : > { %v1783_v37 = vpop.eup %1782 }
 0x678   : > { %v830_v39 = vmul.f32 %v1783_v37, %v813_v30  ;;  %v822_v40 = vsel %vm821_vm12, %v1781_v29, %v818_v36  ;;  %vm835_vm14 = vweird.f32 %v1783_v37  ;;  %v455_v30 = vadd.f32 %v2059_v61, %v1999_v9 }
 0x679   : > { %v827_v42 = vsel %vm824_vm13, %v826_v38, %v822_v40  ;;  %vm836_vm1 = vmor %vm834_vm15, %vm835_vm14 }
 0x67a   : > { %v864_v43 = vmul.f32 %v859_v41, %v827_v42  ;;  %v831_v44 = vsub.f32 1.0, %v830_v39 }
 0x67c   : > { %868 = vrot.lane.b32.xlu2 %v864_v43, %s1885_s28  ;;  %v832_v46 = vmul.f32 %v1783_v37, %v831_v44 }
 0x67e   : > { %v833_v48 = vadd.f32 %v1783_v37, %v832_v46 }
 0x680   : > { %v837_v54 = vsel %vm836_vm1, %v1783_v37, %v833_v48 }
 0x681   : > { %v842_v56 = vsel %vm839_vm2, %v841_v51, %v837_v54 }
 0x682   : > { %v865_v57 = vmul.f32 %v861_v55, %v842_v56 }
 0x684   : > { %870 = vrot.lane.b32.xlu1 %v865_v57, %s1885_s28 }
 0x6d6   : > { %v869_v60 = vpop.permute.xlu2 %868 }
 0x6d7   : > { %v849_v58 = vpop.permute.xlu1 %848 }
 0x6d8   : > { %v854_v59 = vmul.f32 %v849_v58, %v827_v42 }
 0x6da   : > { %v874_v62 = vadd.f32 %v869_v60, %v854_v59 }
 0x6dc   : > { %1784 = vtanh.f32 %v874_v62 }
 0x6df   : > { %v851_v4 = vpop.permute.xlu0 %850 }
 0x6e0   : > { %v855_v5 = vmul.f32 %v851_v4, %v842_v56 }
 0x6e2   : > { %v1785_v63 = vpop.eup %1784 }
 0x6e3   : > { %880 = vrot.lane.b32.xlu2 %v1785_v63, %s1884_s27 }
 0x6f6   : > { %v871_v6 = vpop.permute.xlu1 %870 }
 0x6f7   : > { %v875_v7 = vadd.f32 %v871_v6, %v855_v5 }
 0x6f9   : > { %1786 = vtanh.f32 %v875_v7 }
 0x6ff   : > { %v1787_v8 = vpop.eup %1786 }
 0x700   : > { %882 = vrot.lane.b32.xlu0 %v1787_v8, %s1884_s27 }
 0x708   : > { %975 = vrot.lane.b32.xlu0 %v874_v62, %s1885_s28 }
 0x73d   : > { %v881_v13 = vpop.permute.xlu2 %880 }
 0x73e   : > { %v886_v49 = vmul.f32 %v881_v13, %v827_v42 }
 0x740   : > { %890 = vrot.lane.b32.xlu1 %v886_v49, %s1886_s18 }
 0x748   : > { %977 = vrot.lane.b32.xlu1 %v875_v7, %s1885_s28 }
 0x772   : > { %v883_v52 = vpop.permute.xlu0 %882 }
 0x773   : > { %v887_v53 = vmul.f32 %v883_v52, %v842_v56 }
 0x775   : > { %892 = vrot.lane.b32.xlu2 %v887_v53, %s1886_s18 }
 0x77a   : > { %v976_v34 = vpop.permute.xlu0 %975 }
 0x7b2   : > { %v891_v14 = vpop.permute.xlu1 %890 }
 0x7b3   : > { %1672 = vmatmul.msk.f32.vlgmr.msra.gmra.mxu1 %vm361_vm0, %v891_v14  ;;  %v458_v14 = vadd.f32 %v2093_v10, %v1999_v9 }
 0x7ba   : > { %v978_v54 = vpop.permute.xlu1 %977 }
 0x7cf   : > { %v893_v1 = vpop.permute.xlu2 %892 }
 0x7d0   : > { %1673 = vmatmul.msk.f32.gmra.mxu1 %vm361_vm0, %v893_v1 }
 0x830   : > { %v915_v17 = vpop.f32.mrf.mxu1 }
 0x831   : > { %v921_v18 = vadd.f32 %v915_v17, %v452_v3 }
 0x833   : > { %v1674_v19 = vmul.f32 -1.442695, %v921_v18  ;;  %1788 = vtanh.f32 %v921_v18 }
 0x835   : > { %1790 = vpow2.f32 %v1674_v19 }
 0x839   : > { %v1789_v20 = vpop.eup %1788 }
 0x83a   : > { %965 = vrot.lane.b32.xlu2 %v1789_v20, %s1884_s27 }
 0x83b   : > { %v1791_v21 = vpop.eup %1790 }
 0x83c   : > { %v929_v22 = vadd.f32 1.0, %v1791_v21 }
 0x83e   : > { %1792 = vrcp.f32 %v929_v22  ;;  %v942_v26 = vand.u32 2147483648, %v929_v22  ;;  %v940_v28 = vand.u32 2147483647, %v929_v22  ;;  %vm936_vm4 = vweird.f32 %v929_v22 }
 0x840   : > { %v943_v31 = vor.u32 1.1754944e-38, %v942_v26  ;;  %vm941_vm6 = vcmp.eq.f32.partialorder %v940_v28, 8.507059e+37 }
 0x844   : > { %v1793_v23 = vpop.eup %1792 }
 0x845   : > { %v932_v24 = vmul.f32 %v1793_v23, %v929_v22  ;;  %vm937_vm3 = vweird.f32 %v1793_v23 }
 0x846   : > { %vm938_vm5 = vmor %vm936_vm4, %vm937_vm3 }
 0x847   : > { %v933_v25 = vsub.f32 1.0, %v932_v24 }
 0x849   : > { %v934_v27 = vmul.f32 %v1793_v23, %v933_v25 }
 0x84b   : > { %v935_v29 = vadd.f32 %v1793_v23, %v934_v27 }
 0x84d   : > { %v918_v32 = vpop.f32.mrf.mxu1  ;;  %v939_v33 = vsel %vm938_vm5, %v1793_v23, %v935_v29 }
 0x84e   : > { %v922_v35 = vadd.f32 %v918_v32, %v455_v30  ;;  %v944_v36 = vsel %vm941_vm6, %v943_v31, %v939_v33  ;;  %v461_v30 = vadd.f32 %v2095_v11, %v1999_v9 }
 0x84f   : > { %v981_v37 = vmul.f32 %v976_v34, %v944_v36 }
 0x850   : > { %v1675_v38 = vmul.f32 -1.442695, %v922_v35  ;;  %1794 = vtanh.f32 %v922_v35 }
 0x851   : > { %985 = vrot.lane.b32.xlu0 %v981_v37, %s1885_s28 }
 0x852   : > { %1796 = vpow2.f32 %v1675_v38 }
 0x856   : > { %v1795_v39 = vpop.eup %1794 }
 0x857   : > { %967 = vrot.lane.b32.xlu1 %v1795_v39, %s1884_s27 }
 0x858   : > { %v1797_v40 = vpop.eup %1796 }
 0x859   : > { %v930_v41 = vadd.f32 1.0, %v1797_v40 }
 0x85b   : > { %1798 = vrcp.f32 %v930_v41  ;;  %v957_v44 = vand.u32 2147483648, %v930_v41  ;;  %v955_v46 = vand.u32 2147483647, %v930_v41  ;;  %vm951_vm8 = vweird.f32 %v930_v41 }
 0x85d   : > { %v958_v48 = vor.u32 1.1754944e-38, %v957_v44  ;;  %vm956_vm10 = vcmp.eq.f32.partialorder %v955_v46, 8.507059e+37 }
 0x861   : > { %v1799_v61 = vpop.eup %1798 }
 0x862   : > { %v947_v42 = vmul.f32 %v1799_v61, %v930_v41  ;;  %vm952_vm7 = vweird.f32 %v1799_v61 }
 0x863   : > { %vm953_vm9 = vmor %vm951_vm8, %vm952_vm7 }
 0x864   : > { %v948_v43 = vsub.f32 1.0, %v947_v42 }
 0x866   : > { %v949_v45 = vmul.f32 %v1799_v61, %v948_v43 }
 0x868   : > { %v950_v47 = vadd.f32 %v1799_v61, %v949_v45 }
 0x86a   : > { %v954_v51 = vsel %vm953_vm9, %v1799_v61, %v950_v47 }
 0x86b   : > { %v959_v55 = vsel %vm956_vm10, %v958_v48, %v954_v51 }
 0x86c   : > { %v982_v56 = vmul.f32 %v978_v54, %v959_v55 }
 0x86e   : > { %987 = vrot.lane.b32.xlu2 %v982_v56, %s1885_s28 }
 0x894   : > { %v966_v57 = vpop.permute.xlu2 %965 }
 0x895   : > { %v971_v58 = vmul.f32 %v966_v57, %v944_v36 }
 0x8c3   : > { %v986_v59 = vpop.permute.xlu0 %985 }
 0x8c4   : > { %v991_v60 = vadd.f32 %v986_v59, %v971_v58 }
 0x8c6   : > { %1800 = vtanh.f32 %v991_v60 }
 0x8c8   : > { %v988_v4 = vpop.permute.xlu2 %987 }
 0x8c9   : > { %v968_v62 = vpop.permute.xlu1 %967 }
 0x8ca   : > { %v972_v63 = vmul.f32 %v968_v62, %v959_v55 }
 0x8cc   : > { %v1801_v5 = vpop.eup %1800  ;;  %v992_v6 = vadd.f32 %v988_v4, %v972_v63 }
 0x8cd   : > { %997 = vrot.lane.b32.xlu0 %v1801_v5, %s1884_s27 }
 0x8ce   : > { %1802 = vtanh.f32 %v992_v6 }
 0x8d4   : > { %v1803_v7 = vpop.eup %1802 }
 0x8d5   : > { %999 = vrot.lane.b32.xlu1 %v1803_v7, %s1884_s27 }
 0x8dd   : > { %1092 = vrot.lane.b32.xlu1 %v991_v60, %s1885_s28 }
 0x93f   : > { %v998_v8 = vpop.permute.xlu0 %997 }
 0x940   : > { %v1003_v13 = vmul.f32 %v998_v8, %v944_v36 }
 0x942   : > { %1007 = vrot.lane.b32.xlu2 %v1003_v13, %s1886_s18  ;;  %v464_v13 = vadd.f32 %v2097_v12, %v1999_v9 }
 0x947   : > { %v1000_v49 = vpop.permute.xlu1 %999 }
 0x948   : > { %v1004_v50 = vmul.f32 %v1000_v49, %v959_v55 }
 0x94a   : > { %1094 = vrot.lane.b32.xlu2 %v992_v6, %s1885_s28  ;;  %1009 = vrot.lane.b32.xlu0 %v1004_v50, %s1886_s18 }
 0x94f   : > { %v1093_v28 = vpop.permute.xlu1 %1092 }
 0x99c   : > { %v1008_v52 = vpop.permute.xlu2 %1007 }
 0x99d   : > { %1676 = vmatmul.msk.f32.vlgmr.msra.gmra.mxu2 %vm361_vm0, %v1008_v52 }
 0x9a4   : > { %v1095_v45 = vpop.permute.xlu2 %1094 }
 0x9bc   : > { %v1010_v53 = vpop.permute.xlu0 %1009 }
 0x9bd   : > { %1677 = vmatmul.msk.f32.gmra.mxu2 %vm361_vm0, %v1010_v53  ;;  %v467_v53 = vadd.f32 %v2127_v15, %v1999_v9 }
 0xa20   : > { %v1032_v1 = vpop.f32.mrf.mxu2 }
 0xa21   : > { %v1038_v2 = vadd.f32 %v1032_v1, %v458_v14 }
 0xa23   : > { %v1678_v3 = vmul.f32 -1.442695, %v1038_v2  ;;  %1804 = vtanh.f32 %v1038_v2 }
 0xa25   : > { %1806 = vpow2.f32 %v1678_v3 }
 0xa29   : > { %v1805_v17 = vpop.eup %1804 }
 0xa2a   : > { %1082 = vrot.lane.b32.xlu0 %v1805_v17, %s1884_s27 }
 0xa2b   : > { %v1807_v18 = vpop.eup %1806 }
 0xa2c   : > { %v1046_v19 = vadd.f32 1.0, %v1807_v18 }
 0xa2e   : > { %1808 = vrcp.f32 %v1046_v19  ;;  %v1059_v23 = vand.u32 2147483648, %v1046_v19  ;;  %v1057_v25 = vand.u32 2147483647, %v1046_v19  ;;  %vm1053_vm12 = vweird.f32 %v1046_v19 }
 0xa30   : > { %v1060_v10 = vor.u32 1.1754944e-38, %v1059_v23  ;;  %vm1058_vm14 = vcmp.eq.f32.partialorder %v1057_v25, 8.507059e+37 }
 0xa34   : > { %v1809_v20 = vpop.eup %1808 }
 0xa35   : > { %v1049_v21 = vmul.f32 %v1809_v20, %v1046_v19  ;;  %vm1054_vm11 = vweird.f32 %v1809_v20 }
 0xa36   : > { %vm1055_vm13 = vmor %vm1053_vm12, %vm1054_vm11 }
 0xa37   : > { %v1050_v22 = vsub.f32 1.0, %v1049_v21 }
 0xa39   : > { %v1051_v24 = vmul.f32 %v1809_v20, %v1050_v22 }
 0xa3b   : > { %v1052_v26 = vadd.f32 %v1809_v20, %v1051_v24 }
 0xa3d   : > { %v1056_v27 = vsel %vm1055_vm13, %v1809_v20, %v1052_v26 }
 0xa3e   : > { %v1061_v29 = vsel %vm1058_vm14, %v1060_v10, %v1056_v27 }
 0xa3f   : > { %v1098_v31 = vmul.f32 %v1093_v28, %v1061_v29 }
 0xa40   : > { %v1035_v32 = vpop.f32.mrf.mxu2 }
 0xa41   : > { %v1039_v33 = vadd.f32 %v1035_v32, %v461_v30  ;;  %1102 = vrot.lane.b32.xlu1 %v1098_v31, %s1885_s28 }
 0xa43   : > { %v1679_v34 = vmul.f32 -1.442695, %v1039_v33  ;;  %1810 = vtanh.f32 %v1039_v33 }
 0xa45   : > { %1812 = vpow2.f32 %v1679_v34 }
 0xa49   : > { %v1811_v35 = vpop.eup %1810 }
 0xa4a   : > { %1084 = vrot.lane.b32.xlu2 %v1811_v35, %s1884_s27 }
 0xa4b   : > { %v1813_v36 = vpop.eup %1812 }
 0xa4c   : > { %v1047_v37 = vadd.f32 1.0, %v1813_v36 }
 0xa4e   : > { %1814 = vrcp.f32 %v1047_v37  ;;  %v1074_v41 = vand.u32 2147483648, %v1047_v37  ;;  %v1072_v11 = vand.u32 2147483647, %v1047_v37  ;;  %vm1068_vm1 = vweird.f32 %v1047_v37 }
 0xa50   : > { %v1075_v43 = vor.u32 1.1754944e-38, %v1074_v41  ;;  %vm1073_vm3 = vcmp.eq.f32.partialorder %v1072_v11, 8.507059e+37 }
 0xa54   : > { %v1815_v38 = vpop.eup %1814 }
 0xa55   : > { %v1064_v39 = vmul.f32 %v1815_v38, %v1047_v37  ;;  %vm1069_vm15 = vweird.f32 %v1815_v38 }
 0xa56   : > { %vm1070_vm2 = vmor %vm1068_vm1, %vm1069_vm15 }
 0xa57   : > { %v1065_v40 = vsub.f32 1.0, %v1064_v39 }
 0xa59   : > { %v1066_v61 = vmul.f32 %v1815_v38, %v1065_v40 }
 0xa5b   : > { %v1067_v42 = vadd.f32 %v1815_v38, %v1066_v61 }
 0xa5d   : > { %v1071_v44 = vsel %vm1070_vm2, %v1815_v38, %v1067_v42 }
 0xa5e   : > { %v1076_v46 = vsel %vm1073_vm3, %v1075_v43, %v1071_v44 }
 0xa5f   : > { %v1099_v47 = vmul.f32 %v1095_v45, %v1076_v46 }
 0xa61   : > { %1104 = vrot.lane.b32.xlu0 %v1099_v47, %s1885_s28 }
 0xa9c   : > { %v1083_v48 = vpop.permute.xlu0 %1082 }
 0xa9d   : > { %v1088_v51 = vmul.f32 %v1083_v48, %v1061_v29 }
 0xaa4   : > { %v1085_v57 = vpop.permute.xlu2 %1084 }
 0xaa5   : > { %v1089_v58 = vmul.f32 %v1085_v57, %v1076_v46 }
 0xab3   : > { %v1103_v54 = vpop.permute.xlu1 %1102 }
 0xab4   : > { %v1108_v55 = vadd.f32 %v1103_v54, %v1088_v51 }
 0xab6   : > { %1816 = vtanh.f32 %v1108_v55 }
 0xabc   : > { %v1817_v56 = vpop.eup %1816 }
 0xabd   : > { %1114 = vrot.lane.b32.xlu1 %v1817_v56, %s1884_s27 }
 0xad3   : > { %v1105_v59 = vpop.permute.xlu0 %1104 }
 0xad4   : > { %v1109_v60 = vadd.f32 %v1105_v59, %v1089_v58 }
 0xad6   : > { %1818 = vtanh.f32 %v1109_v60 }
 0xadc   : > { %v1819_v62 = vpop.eup %1818 }
 0xadd   : > { %1116 = vrot.lane.b32.xlu2 %v1819_v62, %s1884_s27  ;;  %v470_v62 = vadd.f32 %v2129_v0, %v1999_v9  ;;  %v473_v0 = vadd.f32 %v2131_v16, %v1999_v9 }
 0xae5   : > { %1209 = vrot.lane.b32.xlu2 %v1108_v55, %s1885_s28 }
 0xb2f   : > { %v1115_v63 = vpop.permute.xlu1 %1114 }
 0xb30   : > { %v1120_v4 = vmul.f32 %v1115_v63, %v1061_v29 }
 0xb32   : > { %1124 = vrot.lane.b32.xlu0 %v1120_v4, %s1886_s18 }
 0xb37   : > { %v1117_v5 = vpop.permute.xlu2 %1116 }
 0xb38   : > { %v1121_v6 = vmul.f32 %v1117_v5, %v1076_v46 }
 0xb3a   : > { %1126 = vrot.lane.b32.xlu1 %v1121_v6, %s1886_s18  ;;  %1211 = vrot.lane.b32.xlu0 %v1109_v60, %s1885_s28 }
 0xb3f   : > { %v1210_v30 = vpop.permute.xlu2 %1209 }
 0xba4   : > { %v1125_v7 = vpop.permute.xlu0 %1124 }
 0xba5   : > { %1680 = vmatmul.msk.f32.vlgmr.msra.gmra.mxu3 %vm361_vm0, %v1125_v7 }
 0xbac   : > { %v1127_v8 = vpop.permute.xlu1 %1126  ;;  %v1212_v40 = vpop.permute.xlu0 %1211 }
 0xbad   : > { %1681 = vmatmul.msk.f32.gmra.mxu3 %vm361_vm0, %v1127_v8 }
 0xc28   : > { %v1149_v49 = vpop.f32.mrf.mxu3 }
 0xc29   : > { %v1155_v50 = vadd.f32 %v1149_v49, %v464_v13 }
 0xc2b   : > { %v1682_v52 = vmul.f32 -1.442695, %v1155_v50  ;;  %1820 = vtanh.f32 %v1155_v50 }
 0xc2d   : > { %1822 = vpow2.f32 %v1682_v52 }
 0xc30   : > { %v1152_v14 = vpop.f32.mrf.mxu3 }
 0xc31   : > { %v1821_v1 = vpop.eup %1820  ;;  %v1156_v2 = vadd.f32 %v1152_v14, %v467_v53 }
 0xc32   : > { %1199 = vrot.lane.b32.xlu1 %v1821_v1, %s1884_s27 }
 0xc33   : > { %v1823_v3 = vpop.eup %1822  ;;  %v1683_v17 = vmul.f32 -1.442695, %v1156_v2  ;;  %1824 = vtanh.f32 %v1156_v2 }
 0xc34   : > { %v1163_v18 = vadd.f32 1.0, %v1823_v3 }
 0xc35   : > { %1826 = vpow2.f32 %v1683_v17 }
 0xc36   : > { %1828 = vrcp.f32 %v1163_v18  ;;  %v1176_v23 = vand.u32 2147483648, %v1163_v18  ;;  %v1174_v25 = vand.u32 2147483647, %v1163_v18  ;;  %vm1170_vm5 = vweird.f32 %v1163_v18 }
 0xc38   : > { %v1177_v27 = vor.u32 1.1754944e-38, %v1176_v23  ;;  %vm1175_vm7 = vcmp.eq.f32.partialorder %v1174_v25, 8.507059e+37 }
 0xc39   : > { %v1825_v12 = vpop.eup %1824 }
 0xc3a   : > { %1201 = vrot.lane.b32.xlu0 %v1825_v12, %s1884_s27 }
 0xc3b   : > { %v1827_v19 = vpop.eup %1826 }
 0xc3c   : > { %v1829_v20 = vpop.eup %1828  ;;  %v1164_v21 = vadd.f32 1.0, %v1827_v19 }
 0xc3d   : > { %v1166_v22 = vmul.f32 %v1829_v20, %v1163_v18  ;;  %vm1171_vm4 = vweird.f32 %v1829_v20 }
 0xc3e   : > { %1830 = vrcp.f32 %v1164_v21  ;;  %vm1172_vm6 = vmor %vm1170_vm5, %vm1171_vm4  ;;  %v1191_v34 = vand.u32 2147483648, %v1164_v21  ;;  %v1189_v36 = vand.u32 2147483647, %v1164_v21  ;;  %vm1185_vm9 = vweird.f32 %v1164_v21 }
 0xc3f   : > { %v1167_v15 = vsub.f32 1.0, %v1166_v22 }
 0xc40   : > { %v1192_v38 = vor.u32 1.1754944e-38, %v1191_v34  ;;  %vm1190_vm11 = vcmp.eq.f32.partialorder %v1189_v36, 8.507059e+37 }
 0xc41   : > { %v1168_v24 = vmul.f32 %v1829_v20, %v1167_v15 }
 0xc43   : > { %v1169_v26 = vadd.f32 %v1829_v20, %v1168_v24 }
 0xc44   : > { %v1831_v10 = vpop.eup %1830 }
 0xc45   : > { %v1181_v28 = vmul.f32 %v1831_v10, %v1164_v21  ;;  %v1173_v29 = vsel %vm1172_vm6, %v1829_v20, %v1169_v26  ;;  %vm1186_vm8 = vweird.f32 %v1831_v10 }
 0xc46   : > { %v1178_v31 = vsel %vm1175_vm7, %v1177_v27, %v1173_v29  ;;  %vm1187_vm10 = vmor %vm1185_vm9, %vm1186_vm8 }
 0xc47   : > { %v1215_v32 = vmul.f32 %v1210_v30, %v1178_v31  ;;  %v1182_v33 = vsub.f32 1.0, %v1181_v28 }
 0xc49   : > { %1219 = vrot.lane.b32.xlu2 %v1215_v32, %s1885_s28  ;;  %v1183_v35 = vmul.f32 %v1831_v10, %v1182_v33 }
 0xc4b   : > { %v1184_v37 = vadd.f32 %v1831_v10, %v1183_v35 }
 0xc4d   : > { %v1188_v39 = vsel %vm1187_vm10, %v1831_v10, %v1184_v37 }
 0xc4e   : > { %v1193_v41 = vsel %vm1190_vm11, %v1192_v38, %v1188_v39 }
 0xc4f   : > { %v1216_v61 = vmul.f32 %v1212_v40, %v1193_v41 }
 0xc51   : > { %1221 = vrot.lane.b32.xlu1 %v1216_v61, %s1885_s28 }
 0xca3   : > { %v1220_v43 = vpop.permute.xlu2 %1219 }
 0xca4   : > { %v1200_v11 = vpop.permute.xlu1 %1199 }
 0xca5   : > { %v1205_v42 = vmul.f32 %v1200_v11, %v1178_v31 }
 0xca7   : > { %v1225_v44 = vadd.f32 %v1220_v43, %v1205_v42 }
 0xca9   : > { %1832 = vtanh.f32 %v1225_v44 }
 0xcac   : > { %v1202_v46 = vpop.permute.xlu0 %1201 }
 0xcad   : > { %v1206_v47 = vmul.f32 %v1202_v46, %v1193_v41 }
 0xcaf   : > { %v1833_v45 = vpop.eup %1832 }
 0xcb0   : > { %1231 = vrot.lane.b32.xlu2 %v1833_v45, %s1884_s27 }
 0xcc3   : > { %v1222_v48 = vpop.permute.xlu1 %1221 }
 0xcc4   : > { %v1226_v51 = vadd.f32 %v1222_v48, %v1206_v47 }
 0xcc6   : > { %1834 = vtanh.f32 %v1226_v51 }
 0xccc   : > { %v1835_v54 = vpop.eup %1834 }
 0xccd   : > { %1233 = vrot.lane.b32.xlu0 %v1835_v54, %s1884_s27 }
 0xcd5   : > { %1326 = vrot.lane.b32.xlu0 %v1225_v44, %s1885_s28 }
 0xd0a   : > { %v1232_v55 = vpop.permute.xlu2 %1231 }
 0xd0b   : > { %v1237_v56 = vmul.f32 %v1232_v55, %v1178_v31 }
 0xd0d   : > { %1241 = vrot.lane.b32.xlu1 %v1237_v56, %s1886_s18 }
 0xd15   : > { %1328 = vrot.lane.b32.xlu1 %v1226_v51, %s1885_s28 }
 0xd3f   : > { %v1234_v57 = vpop.permute.xlu0 %1233 }
 0xd40   : > { %v1238_v58 = vmul.f32 %v1234_v57, %v1193_v41 }
 0xd42   : > { %1243 = vrot.lane.b32.xlu2 %v1238_v58, %s1886_s18 }
 0xd47   : > { %v1327_v18 = vpop.permute.xlu0 %1326 }
 0xd7f   : > { %v1242_v59 = vpop.permute.xlu1 %1241 }
 0xd80   : > { %1684 = vmatmul.msk.f32.vlgmr.msrb.gmra.mxu1 %vm361_vm0, %v1242_v59 }
 0xd87   : > { %v1329_v31 = vpop.permute.xlu1 %1328 }
 0xd9c   : > { %v1244_v60 = vpop.permute.xlu2 %1243 }
 0xd9d   : > { %1685 = vmatmul.msk.f32.gmra.mxu1 %vm361_vm0, %v1244_v60 }
 0xdfd   : > { %v1266_v63 = vpop.f32.mrf.mxu1 }
 0xdfe   : > { %v1272_v4 = vadd.f32 %v1266_v63, %v470_v62 }
 0xe00   : > { %v1686_v5 = vmul.f32 -1.442695, %v1272_v4  ;;  %1836 = vtanh.f32 %v1272_v4 }
 0xe02   : > { %1838 = vpow2.f32 %v1686_v5 }
 0xe06   : > { %v1837_v6 = vpop.eup %1836 }
 0xe07   : > { %1316 = vrot.lane.b32.xlu2 %v1837_v6, %s1884_s27 }
 0xe08   : > { %v1839_v7 = vpop.eup %1838 }
 0xe09   : > { %v1280_v8 = vadd.f32 1.0, %v1839_v7 }
 0xe0b   : > { %1840 = vrcp.f32 %v1280_v8  ;;  %v1293_v52 = vand.u32 2147483648, %v1280_v8  ;;  %v1291_v14 = vand.u32 2147483647, %v1280_v8  ;;  %vm1287_vm13 = vweird.f32 %v1280_v8 }
 0xe0d   : > { %v1294_v2 = vor.u32 1.1754944e-38, %v1293_v52  ;;  %vm1292_vm15 = vcmp.eq.f32.partialorder %v1291_v14, 8.507059e+37 }
 0xe11   : > { %v1841_v13 = vpop.eup %1840 }
 0xe12   : > { %v1283_v49 = vmul.f32 %v1841_v13, %v1280_v8  ;;  %vm1288_vm12 = vweird.f32 %v1841_v13 }
 0xe13   : > { %vm1289_vm14 = vmor %vm1287_vm13, %vm1288_vm12 }
 0xe14   : > { %v1284_v50 = vsub.f32 1.0, %v1283_v49 }
 0xe16   : > { %v1285_v53 = vmul.f32 %v1841_v13, %v1284_v50 }
 0xe18   : > { %v1286_v1 = vadd.f32 %v1841_v13, %v1285_v53 }
 0xe1a   : > { %v1269_v3 = vpop.f32.mrf.mxu1  ;;  %v1290_v17 = vsel %vm1289_vm14, %v1841_v13, %v1286_v1 }
 0xe1b   : > { %v1273_v12 = vadd.f32 %v1269_v3, %v473_v0  ;;  %v1295_v19 = vsel %vm1292_vm15, %v1294_v2, %v1290_v17 }
 0xe1c   : > { %v1332_v20 = vmul.f32 %v1327_v18, %v1295_v19 }
 0xe1d   : > { %v1687_v21 = vmul.f32 -1.442695, %v1273_v12  ;;  %1842 = vtanh.f32 %v1273_v12 }
 0xe1e   : > { %1336 = vrot.lane.b32.xlu0 %v1332_v20, %s1885_s28 }
 0xe1f   : > { %1844 = vpow2.f32 %v1687_v21 }
 0xe23   : > { %v1843_v22 = vpop.eup %1842 }
 0xe24   : > { %1318 = vrot.lane.b32.xlu1 %v1843_v22, %s1884_s27 }
 0xe25   : > { %v1845_v15 = vpop.eup %1844 }
 0xe26   : > { %v1281_v23 = vadd.f32 1.0, %v1845_v15 }
 0xe28   : > { %1846 = vrcp.f32 %v1281_v23  ;;  %v1308_v26 = vand.u32 2147483648, %v1281_v23  ;;  %v1306_v27 = vand.u32 2147483647, %v1281_v23  ;;  %vm1302_vm2 = vweird.f32 %v1281_v23 }
 0xe2a   : > { %v1309_v29 = vor.u32 1.1754944e-38, %v1308_v26  ;;  %vm1307_vm4 = vcmp.eq.f32.partialorder %v1306_v27, 8.507059e+37  ;;  %v1460_v26 = vld [vmem:[%s2278_s5 + $0x30] sm:$0xff]  ;;  %v1458_v27 = vld [vmem:[%s2278_s5 + $0x20] sm:$0xff] }
 0xe2e   : > { %v1847_v16 = vpop.eup %1846 }
 0xe2f   : > { %v1298_v24 = vmul.f32 %v1847_v16, %v1281_v23  ;;  %vm1303_vm1 = vweird.f32 %v1847_v16 }
 0xe30   : > { %vm1304_vm3 = vmor %vm1302_vm2, %vm1303_vm1  ;;  %vm1567_vm2 = vcmask 31744  }
 0xe31   : > { %v1299_v25 = vsub.f32 1.0, %v1298_v24 }
 0xe33   : > { %v1300_v10 = vmul.f32 %v1847_v16, %v1299_v25  ;;  %v1461_v25 = vld [vmem:[%s2278_s5 + $0x38] sm:$0xff] }
 0xe34   : > { %1479 = vmatpush.msrb.mxu3 %v1461_v25 }
 0xe35   : > { %v1301_v28 = vadd.f32 %v1847_v16, %v1300_v10  ;;  %v1459_v10 = vld [vmem:[%s2278_s5 + $0x28] sm:$0xff] }
 0xe36   : > { %1480 = vmatpush.msrb.mxu3 %v1460_v26 }
 0xe37   : > { %v1305_v30 = vsel %vm1304_vm3, %v1847_v16, %v1301_v28 }
 0xe38   : > { %v1310_v32 = vsel %vm1307_vm4, %v1309_v29, %v1305_v30  ;;  %1481 = vmatpush.msrb.mxu3 %v1459_v10 }
 0xe39   : > { %v1333_v33 = vmul.f32 %v1329_v31, %v1310_v32 }
 0xe3a   : > { %1482 = vmatpush.msrb.mxu3 %v1458_v27 }
 0xe3b   : > { %1338 = vrot.lane.b32.xlu2 %v1333_v33, %s1885_s28  ;;  %s1641_s28 = sshll.u32 %s2284_s10, 3 }
 0xe3c   : > { %s330_s12 = scalar_lea.vmem %s2282_s9, %s1641_s28 }
 0xe61   : > { %v1317_v34 = vpop.permute.xlu2 %1316 }
 0xe62   : > { %v1322_v35 = vmul.f32 %v1317_v34, %v1295_v19 }
 0xe90   : > { %v1337_v36 = vpop.permute.xlu0 %1336 }
 0xe91   : > { %v1342_v37 = vadd.f32 %v1337_v36, %v1322_v35  ;;  %v1457_v35 = vld [vmem:[%s2278_s5 + $0x18] sm:$0xff]  ;;  %v1456_v36 = vld [vmem:[%s2278_s5 + $0x10] sm:$0xff] }
 0xe92   : > { %1504 = vmatpush.msra.mxu3 %v1457_v35 }
 0xe93   : > { %1848 = vtanh.f32 %v1342_v37  ;;  %v1455_v37 = vld [vmem:[%s2278_s5 + $0x8] sm:$0xff] }
 0xe94   : > { %1505 = vmatpush.msra.mxu3 %v1456_v36 }
 0xe95   : > { %v1339_v40 = vpop.permute.xlu2 %1338 }
 0xe96   : > { %v1319_v38 = vpop.permute.xlu1 %1318  ;;  %1506 = vmatpush.msra.mxu3 %v1455_v37 }
 0xe97   : > { %v1323_v39 = vmul.f32 %v1319_v38, %v1310_v32  ;;  %v1454_v38 = vld [vmem:[%s2278_s5] sm:$0xff] }
 0xe98   : > { %1507 = vmatpush.msra.mxu3 %v1454_v38 }
 0xe99   : > { %v1849_v41 = vpop.eup %1848  ;;  %v1343_v61 = vadd.f32 %v1339_v40, %v1323_v39 }
 0xe9a   : > { %1348 = vrot.lane.b32.xlu0 %v1849_v41, %s1884_s27  ;;  %v1539_v41 = vld [vmem:[%s2280_s7 + $0x18] sm:$0xff] }
 0xe9b   : > { %1850 = vtanh.f32 %v1343_v61  ;;  %v1538_v61 = vld [vmem:[%s2280_s7 + $0x10] sm:$0xff]  ;;  %1559 = vmatpush.msra.mxu1 %v1539_v41 }
 0xe9d   : > { %1560 = vmatpush.msra.mxu1 %v1538_v61 }
 0xea1   : > { %v1851_v11 = vpop.eup %1850 }
 0xea2   : > { %1350 = vrot.lane.b32.xlu1 %v1851_v11, %s1884_s27  ;;  %v1537_v11 = vld [vmem:[%s2280_s7 + $0x8] sm:$0xff] }
 0xea3   : > { %1561 = vmatpush.msra.mxu1 %v1537_v11 }
 0xf0c   : > { %v1349_v42 = vpop.permute.xlu0 %1348 }
 0xf0d   : > { %v1354_v43 = vmul.f32 %v1349_v42, %v1295_v19  ;;  %v1536_v42 = vld [vmem:[%s2280_s7] sm:$0xff] }
 0xf0e   : > { %1562 = vmatpush.msra.mxu1 %v1536_v42 }
 0xf0f   : > { %1358 = vrot.lane.b32.xlu2 %v1354_v43, %s1886_s18 }
 0xf14   : > { %v1351_v44 = vpop.permute.xlu1 %1350 }
 0xf15   : > { %v1355_v45 = vmul.f32 %v1351_v44, %v1310_v32  ;;  %v1722_v44 = vld [vmem:[%s2279_s6] ss:$0 sm:$0xff] }
 0xf17   : > { %1360 = vrot.lane.b32.xlu0 %v1355_v45, %s1886_s18 }
 0xf69   : > { %v1359_v46 = vpop.permute.xlu2 %1358 }
 0xf6a   : > { %1688 = vmatmul.msk.f32.vlgmr.msrb.gmra.mxu2 %vm361_vm0, %v1359_v46 }
 0xf89   : > { %v1361_v47 = vpop.permute.xlu0 %1360 }
 0xf8a   : > { %1689 = vmatmul.msk.f32.gmra.mxu2 %vm361_vm0, %v1361_v47 }
 0xfed   : > { %v1383_v48 = vpop.f32.mrf.mxu2 }
 0xfee   : > { %v1384_v51 = vadd.f32 %v1383_v48, %v1999_v9 }
 0xff0   : > { %1852 = vtanh.f32 %v1384_v51  ;;  %v1690_v58 = vmul.f32 -1.442695, %v1384_v51 }
 0xff6   : > { %v1853_v54 = vpop.eup %1852 }
 0xff7   : > { %1431 = vrot.lane.b32.xlu1 %v1853_v54, %s1884_s27 }
0x100d   : > { %v1386_v55 = vpop.f32.mrf.mxu2 }
0x100e   : > { %v1387_v56 = vadd.f32 %v1386_v55, %v1999_v9 }
0x1010   : > { %1854 = vtanh.f32 %v1387_v56  ;;  %v1691_v59 = vmul.f32 -1.442695, %v1387_v56 }
0x1011   : > { %1856 = vpow2.f32 %v1690_v58 }
0x1012   : > { %1858 = vpow2.f32 %v1691_v59 }
0x1016   : > { %v1855_v57 = vpop.eup %1854 }
0x1017   : > { %1433 = vrot.lane.b32.xlu2 %v1855_v57, %s1884_s27  ;;  %v1857_v60 = vpop.eup %1856 }
0x1018   : > { %v1395_v62 = vadd.f32 1.0, %v1857_v60  ;;  %v1859_v63 = vpop.eup %1858 }
0x1019   : > { %v1396_v4 = vadd.f32 1.0, %v1859_v63 }
0x101a   : > { %1860 = vrcp.f32 %v1395_v62  ;;  %v1408_v52 = vand.u32 2147483648, %v1395_v62  ;;  %vm1402_vm6 = vweird.f32 %v1395_v62  ;;  %v1406_v53 = vand.u32 2147483647, %v1395_v62 }
0x101b   : > { %1862 = vrcp.f32 %v1396_v4  ;;  %v1423_v12 = vand.u32 2147483648, %v1396_v4  ;;  %vm1417_vm10 = vweird.f32 %v1396_v4  ;;  %v1421_v19 = vand.u32 2147483647, %v1396_v4 }
0x101c   : > { %v1409_v0 = vor.u32 1.1754944e-38, %v1408_v52  ;;  %vm1407_vm8 = vcmp.eq.f32.partialorder %v1406_v53, 8.507059e+37 }
0x101d   : > { %v1424_v21 = vor.u32 1.1754944e-38, %v1423_v12  ;;  %vm1422_vm12 = vcmp.eq.f32.partialorder %v1421_v19, 8.507059e+37 }
0x1020   : > { %v1861_v5 = vpop.eup %1860 }
0x1021   : > { %v1398_v6 = vmul.f32 %v1861_v5, %v1395_v62  ;;  %v1863_v8 = vpop.eup %1862  ;;  %vm1403_vm5 = vweird.f32 %v1861_v5 }
0x1022   : > { %v1413_v9 = vmul.f32 %v1863_v8, %v1396_v4  ;;  %vm1404_vm7 = vmor %vm1402_vm6, %vm1403_vm5  ;;  %vm1418_vm9 = vweird.f32 %v1863_v8 }
0x1023   : > { %v1399_v7 = vsub.f32 1.0, %v1398_v6  ;;  %vm1419_vm11 = vmor %vm1417_vm10, %vm1418_vm9  ;;  %v1723_v6 = vld [vmem:[%s2281_s8] ss:$0 sm:$0xff] }
0x1024   : > { %v1414_v50 = vsub.f32 1.0, %v1413_v9 }
0x1025   : > { %v1400_v13 = vmul.f32 %v1861_v5, %v1399_v7 }
0x1026   : > { %v1415_v1 = vmul.f32 %v1863_v8, %v1414_v50 }
0x1027   : > { %v1401_v49 = vadd.f32 %v1861_v5, %v1400_v13 }
0x1028   : > { %v1416_v18 = vadd.f32 %v1863_v8, %v1415_v1 }
0x1029   : > { %v1405_v14 = vsel %vm1404_vm7, %v1861_v5, %v1401_v49 }
0x102a   : > { %v1410_v2 = vsel %vm1407_vm8, %v1409_v0, %v1405_v14  ;;  %v1420_v20 = vsel %vm1419_vm11, %v1863_v8, %v1416_v18 }
0x102b   : > { %v1425_v15 = vsel %vm1422_vm12, %v1424_v21, %v1420_v20 }
0x1069   : > { %v1432_v3 = vpop.permute.xlu1 %1431 }
0x106a   : > { %v1437_v17 = vmul.f32 %v1432_v3, %v1410_v2 }
0x106c   : > { %1864 = vtanh.f32 %v1437_v17 }
0x1071   : > { %v1434_v22 = vpop.permute.xlu2 %1433 }
0x1072   : > { %v1865_v23 = vpop.eup %1864  ;;  %v1438_v16 = vmul.f32 %v1434_v22, %v1425_v15 }
0x1073   : > { %1443 = vrot.lane.b32.xlu0 %v1865_v23, %s1884_s27 }
0x1074   : > { %1866 = vtanh.f32 %v1438_v16 }
0x107a   : > { %v1867_v24 = vpop.eup %1866 }
0x107b   : > { %1445 = vrot.lane.b32.xlu1 %v1867_v24, %s1884_s27 }
0x10e5   : > { %v1444_v28 = vpop.permute.xlu0 %1443 }
0x10e6   : > { %v1449_v30 = vmul.f32 %v1444_v28, %v1410_v2 }
0x10ed   : > { %v1446_v29 = vpop.permute.xlu1 %1445 }
0x10ee   : > { %v1450_v31 = vmul.f32 %v1446_v29, %v1425_v15 }
0x10f0   : > { %v1451_v32 = vmul.f32 %v1450_v31, %v1449_v30  ;;  %v1452_v33 = vsub.f32 %v1449_v30, %v1450_v31 }
0x10f2   : > { %v1453_v34 = vand.u32 2147483647, %v1452_v33  ;;  %1488 = vrot.lane.b32.xlu0 %v1451_v32, %s1886_s18 }
0x10f4   : > { %1463 = vrot.lane.b32.xlu2 %v1453_v34, %s1886_s18 }
0x114e   : > { %v1464_v39 = vpop.permute.xlu2 %1463 }
0x114f   : > { %1692 = vmatmul.msk.f32.vlgmr.msrb.gmra.mxu3 %vm361_vm0, %v1464_v39 }
0x1164   : > { %v1489_v40 = vpop.permute.xlu0 %1488 }
0x1165   : > { %1693 = vmatmul.msk.f32.vlgmr.msra.gmra.mxu3 %vm361_vm0, %v1489_v40 }
0x11d2   : > { %v1484_v43 = vpop.f32.mrf.mxu3 }
0x11e8   : > { %v1509_v45 = vpop.f32.mrf.mxu3 }
0x11e9   : > { %v1510_v46 = vadd.f32 %v1509_v45, %v1484_v43 }
0x11eb   : > { %v1516_v47 = vadd.f32 %v1722_v44, %v1510_v46 }
0x11ed   : > { %v1694_v48 = vmul.f32 -1.442695, %v1516_v47 }
0x11ef   : > { %1868 = vpow2.f32 %v1694_v48 }
0x11f5   : > { %v1869_v51 = vpop.eup %1868 }
0x11f6   : > { %v1520_v54 = vadd.f32 1.0, %v1869_v51 }
0x11f8   : > { %1870 = vrcp.f32 %v1520_v54  ;;  %v1532_v58 = vand.u32 2147483648, %v1520_v54  ;;  %v1530_v60 = vand.u32 2147483647, %v1520_v54  ;;  %vm1526_vm14 = vweird.f32 %v1520_v54 }
0x11fa   : > { %v1533_v63 = vor.u32 1.1754944e-38, %v1532_v58  ;;  %vm1531_vm1 = vcmp.eq.f32.partialorder %v1530_v60, 8.507059e+37 }
0x11fe   : > { %v1871_v55 = vpop.eup %1870 }
0x11ff   : > { %v1522_v56 = vmul.f32 %v1871_v55, %v1520_v54  ;;  %vm1527_vm13 = vweird.f32 %v1871_v55 }
0x1200   : > { %vm1528_vm15 = vmor %vm1526_vm14, %vm1527_vm13 }
0x1201   : > { %v1523_v57 = vsub.f32 1.0, %v1522_v56 }
0x1203   : > { %v1524_v59 = vmul.f32 %v1871_v55, %v1523_v57 }
0x1205   : > { %v1525_v62 = vadd.f32 %v1871_v55, %v1524_v59 }
0x1207   : > { %v1529_v4 = vsel %vm1528_vm15, %v1871_v55, %v1525_v62 }
0x1208   : > { %v1534_v5 = vsel %vm1531_vm1, %v1533_v63, %v1529_v4 }
0x1209   : > { %1695 = vmatmul.msk.f32.vlgmr.msra.gmra.mxu1 %vm361_vm0, %v1534_v5 }
0x1286   : > { %v1564_v7 = vpop.f32.mrf.mxu1 }
0x1287   : > { %v1565_v8 = vadd.f32 %v1723_v6, %v1564_v7 }
0x1289   : > { %v1568_v13 = vsel %vm1567_vm2, %v1565_v8, -inf }
0x128a   : > { %1569 = vmax.xlane.f32.xlu1 %v1568_v13 }
0x12fd   : > { %v1570_v9 = vpop.xlane.xlu1 %1569 }
0x12fe   : > { %v1571_v49 = vsub.f32 %v1565_v8, %v1570_v9 }
0x1300   : > { %v1572_v50 = vmul.f32 1.442695, %v1571_v49 }
0x1302   : > { %1872 = vpow2.f32 %v1572_v50 }
0x1308   : > { %v1873_v52 = vpop.eup %1872 }
0x1309   : > { %v1574_v53 = vsel %vm1567_vm2, %v1873_v52, 0.0 }
0x130a   : > { %1575 = vadd.xlane.f32.xlu2 %v1574_v53 }
0x137d   : > { %v1576_v14 = vpop.xlane.xlu2 %1575 }
0x137e   : > { %1874 = vlog2.f32 %v1576_v14 }
0x1384   : > { %v1875_v1 = vpop.eup %1874 }
0x1385   : > { %v1578_v0 = vmul.f32 0.6931472, %v1875_v1 }
0x1387   : > { %v1579_v2 = vsub.f32 %v1571_v49, %v1578_v0 }
0x1389   : > { %1580 = vst.msk [vmem:[%s330_s12] sm:$0xff] %vm1567_vm2, %v1579_v2 }
0x138a PF: > { %s19_s30 = sadd.s32 1, %s1882_s30  }
0x138b   : > { %p16_p4 = scmp.ge.s32.totalorder %s19_s30, 4  }
0x138d   :  { %18 = sbr.rel (!%p16_p4) target bundleno = 1 (0x1), region = 86 }

</bundles_post_ra>
